<compile_context>
chip_gen: v6e
topology: v6e:2x2x1
jax: 0.10.0
libtpu: 0.0.40
codegen_flags: <defaults>
</compile_context>

<pallas_src>
import functools

import jax
import jax.numpy as jnp
from jax.experimental import pallas as pl
from jax.experimental.pallas import tpu as pltpu


def _round_up(x, m):
    return ((x + m - 1) // m) * m


# ---------------------------------------------------------------------------
# Kernel
# ---------------------------------------------------------------------------
def sentence_level_kernel(m_ref, inv_ref, emb_ref, w1_ref, b1_ref, w2_ref, b2_ref,
                          out_ref):
    """Fused masked pooling (MXU) + f32 normalization + classifier MLP for one batch tile.

    m_ref  : [TB, 3, S]   binary pooling masks [attn, ent==1, ent==2] (compute dtype)
    inv_ref: [TB, 3, 1]   f32 1/max(count, 1) per mask row
    emb_ref: [TB, S, Hp]  token embeddings (compute dtype, H lane-padded to 128)
    w1_ref : [3, Hp, 512] first linear weight, split along the concat axis
    b1_ref : [1, 512]     f32 bias
    w2_ref : [512, Rp]    second linear weight (lane-padded)
    b2_ref : [1, Rp]      f32 bias (lane-padded)
    out_ref: [TB, Rp]     f32 logits (lane-padded)
    """
    # Masked sums for [sent, ent1, ent2] in one batched MXU contraction (f32 acc),
    # then exact f32 1/count normalization (binary masks stay exact in bf16).
    pooled = jnp.einsum(
        "bks,bsh->bkh", m_ref[...], emb_ref[...],
        preferred_element_type=jnp.float32,
    )                                                       # [TB, 3, Hp] f32
    pooled = (pooled * inv_ref[...]).astype(w1_ref.dtype)   # f32 normalize, MXU dtype

    # combined = concat([sent, ent1, ent2]); Linear(3H,512) as 3 contiguous dots.
    # TODO(synk): pooled[:, k, :] is a sublane-strided view (k padded 3->8 sublanes);
    # a k-leading scratch layout would remove the relayout but needs mixed-rank dots.
    h = b1_ref[...]                                         # f32 [1, 512]
    h = h + jnp.dot(pooled[:, 0, :], w1_ref[0], preferred_element_type=jnp.float32)
    h = h + jnp.dot(pooled[:, 1, :], w1_ref[1], preferred_element_type=jnp.float32)
    h = h + jnp.dot(pooled[:, 2, :], w1_ref[2], preferred_element_type=jnp.float32)

    h = jnp.maximum(h, 0.0)                                 # ReLU (f32 on the VPU)
    # TODO(synk): both Dropout layers are identity (eval mode).

    h = h.astype(w2_ref.dtype)
    out_ref[...] = (
        jnp.dot(h, w2_ref[...], preferred_element_type=jnp.float32) + b2_ref[...]
    )


# ---------------------------------------------------------------------------
# Wrapper
# ---------------------------------------------------------------------------
def _tpu_vmem_budgets():
    """(vmem_limit_cap_bytes, per_emb_buffer_budget_bytes), generation aware."""
    try:
        cap = int(getattr(pltpu.get_tpu_info(), "vmem_capacity_bytes", 0) or 0)
    except Exception:
        cap = 0
    if cap and cap <= 64 * 2**20:                  # v7x-class: leave compiler headroom
        return min(48 * 2**20, cap - 8 * 2**20), 12 * 2**20
    if cap:                                        # v5e / v6e: 128 MiB physical VMEM
        return 100 * 2**20, 20 * 2**20
    return 48 * 2**20, 12 * 2**20                  # unknown: conservative


@functools.partial(jax.jit, static_argnames=("compute_dtype", "tb"))
def sentence_level_forward(emb, attention_mask, entity_mask, params,
                           compute_dtype=jnp.bfloat16, tb=None):
    """emb [B,S,H], attention_mask [B,S], entity_mask [B,S] -> logits [B,R] (f32)."""
    B, S, H = emb.shape
    R = params["w2"].shape[-1]
    R_pad = _round_up(R, 128)                              # lane-dense output slab
    Hp = H if H % 128 == 0 else _round_up(H, 128)          # lane-dense emb / K dim
    itemsize = jnp.dtype(compute_dtype).itemsize

    # --- binary pooling masks (exact in bf16) + f32 inverse counts --------------
    attn = attention_mask.astype(jnp.float32)
    e1 = (entity_mask == 1).astype(jnp.float32)
    e2 = (entity_mask == 2).astype(jnp.float32)
    m = jnp.stack([attn, e1, e2], axis=1)                  # [B, 3, S] binary f32
    inv = 1.0 / jnp.maximum(jnp.sum(m, axis=-1, keepdims=True), 1.0)   # [B,3,1] f32
    m = m.astype(compute_dtype)

    # emb should already arrive in compute_dtype from the encoder (no extra pass).
    emb_c = emb if emb.dtype == compute_dtype else emb.astype(compute_dtype)
    if Hp != H:
        emb_c = jnp.pad(emb_c, ((0, 0), (0, 0), (0, Hp - H)))

    w1 = params["w1"].reshape(3, H, 512).astype(compute_dtype)   # concat-split weight
    if Hp != H:
        w1 = jnp.pad(w1, ((0, 0), (0, Hp - H), (0, 0)))
    b1 = params["b1"].reshape(1, 512).astype(jnp.float32)
    w2 = jnp.zeros((512, R_pad), compute_dtype).at[:, :R].set(
        params["w2"].astype(compute_dtype))
    b2 = jnp.zeros((1, R_pad), jnp.float32).at[:, :R].set(
        params["b2"].reshape(1, R).astype(jnp.float32))

    # --- batch tile size ---------------------------------------------------------
    vmem_cap, emb_budget = _tpu_vmem_budgets()
    align = 16 if itemsize < 4 else 8                      # bf16 packs 16 rows / vreg
    row_bytes = (S * Hp + 3 * S) * itemsize + 3 * 4 + R_pad * 4
    if tb is None:
        tb_cap = max(align, int(emb_budget) // max(row_bytes, 1))
        B_al = _round_up(B, align)
        divs = [t for t in range(align, B_al + 1, align)
                if B_al % t == 0 and t <= tb_cap]
        if not divs:
            divs = [align]
        tb = max(divs)
        if tb == B_al and len(divs) > 1:                   # keep >=2 grid steps (v7x)
            tb = sorted(divs)[-2]
    else:
        tb = max(align, _round_up(int(tb), align))
        tb = min(tb, _round_up(B, align))
    B_pad = _round_up(B, tb)
    if B_pad != B:
        # Only hit when B is not a multiple of the tile; auto-tb picks a divisor of
        # the aligned batch so this full-emb pad copy is normally skipped.
        emb_c = jnp.pad(emb_c, ((0, B_pad - B), (0, 0), (0, 0)))
        m = jnp.pad(m, ((0, B_pad - B), (0, 0), (0, 0)))
        inv = jnp.pad(inv, ((0, B_pad - B), (0, 0), (0, 0)))
    grid = (B_pad // tb,)

    # --- VMEM budget (double-buffered streams + single-buffered weights) ---------
    in_tile_bytes = tb * ((S * Hp + 3 * S) * itemsize + 3 * 4)
    out_tile_bytes = tb * R_pad * 4
    w_bytes = (3 * Hp * 512 + 512 * R_pad) * itemsize + (512 + R_pad) * 4
    vmem_needed = 2 * in_tile_bytes + 2 * out_tile_bytes + w_bytes
    vmem_limit = int(max(32 * 2**20, min(vmem_cap, 2 * vmem_needed)))

    flops = 2 * B_pad * (3 * S * Hp + 3 * Hp * 512 + 512 * R_pad)
    bytes_accessed = (B_pad * ((S * Hp + 3 * S) * itemsize + 3 * 4)
                      + w_bytes + B_pad * R_pad * 4)

    logits_pad = pl.pallas_call(
        sentence_level_kernel,
        out_shape=jax.ShapeDtypeStruct((B_pad, R_pad), jnp.float32),
        grid_spec=pltpu.PrefetchScalarGridSpec(
            num_scalar_prefetch=0,
            grid=grid,
            in_specs=[
                pl.BlockSpec((tb, 3, S), lambda i: (i, 0, 0)),       # masks (streamed)
                pl.BlockSpec((tb, 3, 1), lambda i: (i, 0, 0)),       # 1/count (streamed)
                pl.BlockSpec((tb, S, Hp), lambda i: (i, 0, 0)),      # emb (streamed)
                pl.BlockSpec((3, Hp, 512), lambda i: (0, 0, 0),
                             pipeline_mode=pl.Buffered(1)),          # w1 (resident)
                pl.BlockSpec((1, 512), lambda i: (0, 0),
                             pipeline_mode=pl.Buffered(1)),          # b1 (resident)
                pl.BlockSpec((512, R_pad), lambda i: (0, 0),
                             pipeline_mode=pl.Buffered(1)),          # w2 (resident)
                pl.BlockSpec((1, R_pad), lambda i: (0, 0),
                             pipeline_mode=pl.Buffered(1)),          # b2 (resident)
            ],
            out_specs=pl.BlockSpec((tb, R_pad), lambda i: (i, 0)),
        ),
        compiler_params=pltpu.CompilerParams(
            dimension_semantics=("parallel",),
            vmem_limit_bytes=vmem_limit,
        ),
        cost_estimate=pl.CostEstimate(
            flops=flops, transcendentals=0, bytes_accessed=bytes_accessed),
    )(m, inv, emb_c, w1, b1, w2, b2)

    return logits_pad[:B, :R]


# ---------------------------------------------------------------------------
# Parameter init (Linear(3H,512) -> ReLU -> Linear(512, R))
# ---------------------------------------------------------------------------
def init_params(key, hidden_size, num_relations):
    k1, k2, k3, k4 = jax.random.split(key, 4)
    in1 = 3 * hidden_size
    w1 = jax.random.normal(k1, (in1, 512), jnp.float32) * (1.0 / jnp.sqrt(in1))
    b1 = jax.random.normal(k2, (1, 512), jnp.float32) * 0.01
    w2 = jax.random.normal(k3, (512, num_relations), jnp.float32) * (1.0 / jnp.sqrt(512))
    b2 = jax.random.normal(k4, (1, num_relations), jnp.float32) * 0.01
    return {"w1": w1, "b1": b1, "w2": w2, "b2": b2}


# ---------------------------------------------------------------------------
# Demo / correctness check
# ---------------------------------------------------------------------------
if __name__ == "__main__":
    B, S, H, R = 16, 16, 32, 10
    VOCAB = 100

    key = jax.random.PRNGKey(0)
    k_tbl, k_ids, k_par = jax.random.split(key, 3)

    # TODO(synk): the encoder is an injected dependency in the PyTorch module; it is
    # realized here as an embedding table + masked mean pooling (pooling done in-kernel).
    emb_table = jax.random.normal(k_tbl, (VOCAB, H), jnp.float32) * 0.1
    input_ids = jax.random.randint(k_ids, (B, S), 0, VOCAB)
    emb_f32 = jnp.take(emb_table, input_ids, axis=0)          # [B, S, H]

    # attention mask: first 12 tokens valid
    attention_mask = (jnp.arange(S)[None, :] < 12).astype(jnp.int32) * jnp.ones((B, 1), jnp.int32)
    # entity mask: tokens 1-2 = head entity (1), tokens 4-6 = tail entity (2)
    pos = jnp.arange(S)[None, :]
    entity_mask = jnp.where((pos >= 1) & (pos <= 2), 1,
                            jnp.where((pos >= 4) & (pos <= 6), 2, 0)) * jnp.ones((B, 1), jnp.int32)

    params = init_params(k_par, H, R)

    # Pure-JAX reference (matches the PyTorch forward in eval mode).
    def ref_forward(emb, attn_m, ent_m, p):
        attn = attn_m.astype(jnp.float32)
        e1 = (ent_m == 1).astype(jnp.float32)
        e2 = (ent_m == 2).astype(jnp.float32)
        mm = lambda msk: (emb * msk[:, :, None]).sum(1) / jnp.maximum(
            msk.sum(1, keepdims=True), 1.0)
        comb = jnp.concatenate([mm(attn), mm(e1), mm(e2)], axis=1)
        h = jnp.maximum(comb @ p["w1"] + p["b1"], 0.0)
        return h @ p["w2"] + p["b2"]

    ref_logits = ref_forward(emb_f32, attention_mask, entity_mask, params)

    # f32 path (tight check) -- tb=8 exercises the batch grid (grid=(2,)).
    logits = sentence_level_forward(emb_f32, attention_mask, entity_mask, params,
                                    compute_dtype=jnp.float32, tb=8)
    jax.block_until_ready(logits)
    assert logits.shape == (B, R) and logits.dtype == jnp.float32
    assert jnp.allclose(logits, ref_logits, atol=1e-4, rtol=1e-4)

    # Default bf16 MXU-operand path: the encoder would emit bf16 embeddings directly.
    # Binary masks + f32 in-kernel 1/count keep pooling exact up to emb rounding.
    emb_bf16 = emb_f32.astype(jnp.bfloat16)
    logits_bf16 = sentence_level_forward(emb_bf16, attention_mask, entity_mask, params)
    jax.block_until_ready(logits_bf16)
    assert logits_bf16.shape == (B, R) and logits_bf16.dtype == jnp.float32
    assert bool(jnp.all(jnp.isfinite(logits_bf16)))
    assert jnp.allclose(logits_bf16, ref_logits, atol=1e-1, rtol=1e-1)

    print("KERNEL_OK")
</pallas_src>

<mosaic_0001>
module attributes {stable_mosaic.version = 11 : i64} {
  func.func @sentence_level_kernel(%arg0: i32, %arg1: memref<8x3x16xf32, #tpu.memory_space<vmem>>, %arg2: memref<8x3x1xf32, #tpu.memory_space<vmem>>, %arg3: memref<8x16x128xf32, #tpu.memory_space<vmem>>, %arg4: memref<3x128x512xf32, #tpu.memory_space<vmem>>, %arg5: memref<1x512xf32, #tpu.memory_space<vmem>>, %arg6: memref<512x128xf32, #tpu.memory_space<vmem>>, %arg7: memref<1x128xf32, #tpu.memory_space<vmem>>, %arg8: memref<8x128xf32, #tpu.memory_space<vmem>>) attributes {dimension_semantics = [#tpu.dimension_semantics<parallel>], iteration_bounds = array<i64: 2>, scalar_prefetch = 0 : i64, scratch_operands = 0 : i64, tpu.core_type = #tpu.core_type<tc>, window_params = [{transform_indices = @transform_0, window_bounds = array<i64: 8, 3, 16>}, {transform_indices = @transform_1, window_bounds = array<i64: 8, 3, 1>}, {transform_indices = @transform_2, window_bounds = array<i64: 8, 16, 128>}, {pipeline_mode = #tpu.pipeline_mode<synchronous>, transform_indices = @transform_3, window_bounds = array<i64: 3, 128, 512>}, {pipeline_mode = #tpu.pipeline_mode<synchronous>, transform_indices = @transform_4, window_bounds = array<i64: 1, 512>}, {pipeline_mode = #tpu.pipeline_mode<synchronous>, transform_indices = @transform_5, window_bounds = array<i64: 512, 128>}, {pipeline_mode = #tpu.pipeline_mode<synchronous>, transform_indices = @transform_6, window_bounds = array<i64: 1, 128>}, {transform_indices = @transform_7, window_bounds = array<i64: 8, 128>}]} {
    %c0 = arith.constant 0 : index
    %c0_0 = arith.constant 0 : index
    %c0_1 = arith.constant 0 : index
    %0 = vector.load %arg1[%c0, %c0_0, %c0_1] : memref<8x3x16xf32, #tpu.memory_space<vmem>>, vector<8x3x16xf32>
    %c0_2 = arith.constant 0 : index
    %c0_3 = arith.constant 0 : index
    %c0_4 = arith.constant 0 : index
    %1 = vector.load %arg3[%c0_2, %c0_3, %c0_4] : memref<8x16x128xf32, #tpu.memory_space<vmem>>, vector<8x16x128xf32>
    "tpu.trace_start"() <{level = 10 : i32, message = "bks,bsh->bkh"}> : () -> ()
    %cst = arith.constant dense<0.000000e+00> : vector<8x3x128xf32>
    %2 = tpu.matmul %0, %1, %cst {dimension_numbers = #tpu.dot_dimension_numbers<[2], [1], [1], [2], [0, 0, 0, 1, 1, 2], [0], [0]>} : vector<8x3x16xf32>, vector<8x16x128xf32>, vector<8x3x128xf32> -> vector<8x3x128xf32>
    "tpu.trace_stop"() : () -> ()
    %c0_5 = arith.constant 0 : index
    %c0_6 = arith.constant 0 : index
    %c0_7 = arith.constant 0 : index
    %3 = vector.load %arg2[%c0_5, %c0_6, %c0_7] : memref<8x3x1xf32, #tpu.memory_space<vmem>>, vector<8x3x1xf32>
    %4 = vector.broadcast %3 : vector<8x3x1xf32> to vector<8x3x128xf32>
    %5 = arith.mulf %2, %4 : vector<8x3x128xf32>
    %c0_8 = arith.constant 0 : index
    %c0_9 = arith.constant 0 : index
    %6 = vector.load %arg5[%c0_8, %c0_9] : memref<1x512xf32, #tpu.memory_space<vmem>>, vector<1x512xf32>
    %7 = vector.extract_strided_slice %5 {offsets = [0, 0, 0], sizes = [8, 1, 128], strides = [1, 1, 1]} : vector<8x3x128xf32> to vector<8x1x128xf32>
    %8 = vector.shape_cast %7 : vector<8x1x128xf32> to vector<8x128xf32>
    %c0_10 = arith.constant 0 : index
    %c0_11 = arith.constant 0 : index
    %c0_12 = arith.constant 0 : index
    %9 = vector.load %arg4[%c0_10, %c0_11, %c0_12] : memref<3x128x512xf32, #tpu.memory_space<vmem>>, vector<1x128x512xf32>
    %10 = vector.shape_cast %9 : vector<1x128x512xf32> to vector<128x512xf32>
    %cst_13 = arith.constant dense<0.000000e+00> : vector<8x512xf32>
    %11 = tpu.matmul %8, %10, %cst_13 {dimension_numbers = #tpu.dot_dimension_numbers<[1], [0], [0], [1], [0, 0, 1, 1], [], []>} : vector<8x128xf32>, vector<128x512xf32>, vector<8x512xf32> -> vector<8x512xf32>
    %12 = vector.broadcast %6 : vector<1x512xf32> to vector<8x512xf32>
    %13 = arith.addf %12, %11 : vector<8x512xf32>
    %14 = vector.extract_strided_slice %5 {offsets = [0, 1, 0], sizes = [8, 1, 128], strides = [1, 1, 1]} : vector<8x3x128xf32> to vector<8x1x128xf32>
    %15 = vector.shape_cast %14 : vector<8x1x128xf32> to vector<8x128xf32>
    %c1 = arith.constant 1 : index
    %c0_14 = arith.constant 0 : index
    %c0_15 = arith.constant 0 : index
    %16 = vector.load %arg4[%c1, %c0_14, %c0_15] : memref<3x128x512xf32, #tpu.memory_space<vmem>>, vector<1x128x512xf32>
    %17 = vector.shape_cast %16 : vector<1x128x512xf32> to vector<128x512xf32>
    %cst_16 = arith.constant dense<0.000000e+00> : vector<8x512xf32>
    %18 = tpu.matmul %15, %17, %cst_16 {dimension_numbers = #tpu.dot_dimension_numbers<[1], [0], [0], [1], [0, 0, 1, 1], [], []>} : vector<8x128xf32>, vector<128x512xf32>, vector<8x512xf32> -> vector<8x512xf32>
    %19 = arith.addf %13, %18 : vector<8x512xf32>
    %20 = vector.extract_strided_slice %5 {offsets = [0, 2, 0], sizes = [8, 1, 128], strides = [1, 1, 1]} : vector<8x3x128xf32> to vector<8x1x128xf32>
    %21 = vector.shape_cast %20 : vector<8x1x128xf32> to vector<8x128xf32>
    %c2 = arith.constant 2 : index
    %c0_17 = arith.constant 0 : index
    %c0_18 = arith.constant 0 : index
    %22 = vector.load %arg4[%c2, %c0_17, %c0_18] : memref<3x128x512xf32, #tpu.memory_space<vmem>>, vector<1x128x512xf32>
    %23 = vector.shape_cast %22 : vector<1x128x512xf32> to vector<128x512xf32>
    %cst_19 = arith.constant dense<0.000000e+00> : vector<8x512xf32>
    %24 = tpu.matmul %21, %23, %cst_19 {dimension_numbers = #tpu.dot_dimension_numbers<[1], [0], [0], [1], [0, 0, 1, 1], [], []>} : vector<8x128xf32>, vector<128x512xf32>, vector<8x512xf32> -> vector<8x512xf32>
    %25 = arith.addf %19, %24 : vector<8x512xf32>
    %cst_20 = arith.constant 0.000000e+00 : f32
    %26 = vector.broadcast %cst_20 : f32 to vector<8x512xf32>
    %27 = arith.maximumf %25, %26 : vector<8x512xf32>
    %c0_21 = arith.constant 0 : index
    %c0_22 = arith.constant 0 : index
    %28 = vector.load %arg6[%c0_21, %c0_22] : memref<512x128xf32, #tpu.memory_space<vmem>>, vector<512x128xf32>
    %cst_23 = arith.constant dense<0.000000e+00> : vector<8x128xf32>
    %29 = tpu.matmul %27, %28, %cst_23 {dimension_numbers = #tpu.dot_dimension_numbers<[1], [0], [0], [1], [0, 0, 1, 1], [], []>} : vector<8x512xf32>, vector<512x128xf32>, vector<8x128xf32> -> vector<8x128xf32>
    %c0_24 = arith.constant 0 : index
    %c0_25 = arith.constant 0 : index
    %30 = vector.load %arg7[%c0_24, %c0_25] : memref<1x128xf32, #tpu.memory_space<vmem>>, vector<1x128xf32>
    %31 = vector.broadcast %30 : vector<1x128xf32> to vector<8x128xf32>
    %32 = arith.addf %29, %31 : vector<8x128xf32>
    %c0_26 = arith.constant 0 : index
    %c0_27 = arith.constant 0 : index
    %33 = vector.load %arg8[%c0_26, %c0_27] : memref<8x128xf32, #tpu.memory_space<vmem>>, vector<8x128xf32>
    tpu.vector_store %arg8[%c0_26, %c0_27], %32 {strides = array<i32>} : memref<8x128xf32, #tpu.memory_space<vmem>>, vector<8x128xf32>,
    return
  }
  func.func @transform_0(%arg0: i32) -> (i32, i32, i32) {
    %c0_i32 = arith.constant 0 : i32
    %c0_i32_0 = arith.constant 0 : i32
    %c0_i32_1 = arith.constant 0 : i32
    return %arg0, %c0_i32, %c0_i32_0 : i32, i32, i32
  }
  func.func @transform_1(%arg0: i32) -> (i32, i32, i32) {
    %c0_i32 = arith.constant 0 : i32
    %c0_i32_0 = arith.constant 0 : i32
    %c0_i32_1 = arith.constant 0 : i32
    return %arg0, %c0_i32, %c0_i32_0 : i32, i32, i32
  }
  func.func @transform_2(%arg0: i32) -> (i32, i32, i32) {
    %c0_i32 = arith.constant 0 : i32
    %c0_i32_0 = arith.constant 0 : i32
    %c0_i32_1 = arith.constant 0 : i32
    return %arg0, %c0_i32, %c0_i32_0 : i32, i32, i32
  }
  func.func @transform_3(%arg0: i32) -> (i32, i32, i32) {
    %c0_i32 = arith.constant 0 : i32
    %c0_i32_0 = arith.constant 0 : i32
    %c0_i32_1 = arith.constant 0 : i32
    %c0_i32_2 = arith.constant 0 : i32
    return %c0_i32, %c0_i32_0, %c0_i32_1 : i32, i32, i32
  }
  func.func @transform_4(%arg0: i32) -> (i32, i32) {
    %c0_i32 = arith.constant 0 : i32
    %c0_i32_0 = arith.constant 0 : i32
    %c0_i32_1 = arith.constant 0 : i32
    return %c0_i32, %c0_i32_0 : i32, i32
  }
  func.func @transform_5(%arg0: i32) -> (i32, i32) {
    %c0_i32 = arith.constant 0 : i32
    %c0_i32_0 = arith.constant 0 : i32
    %c0_i32_1 = arith.constant 0 : i32
    return %c0_i32, %c0_i32_0 : i32, i32
  }
  func.func @transform_6(%arg0: i32) -> (i32, i32) {
    %c0_i32 = arith.constant 0 : i32
    %c0_i32_0 = arith.constant 0 : i32
    %c0_i32_1 = arith.constant 0 : i32
    return %c0_i32, %c0_i32_0 : i32, i32
  }
  func.func @transform_7(%arg0: i32) -> (i32, i32) {
    %c0_i32 = arith.constant 0 : i32
    %c0_i32_0 = arith.constant 0 : i32
    return %arg0, %c0_i32 : i32, i32
  }
}

</mosaic_0001>

<bundles_post_ra>
// kernel: sentence_level_forward.1
= control target key start
LH: loop header
LB: loop body
LE: loop exit
PB: predicated region body
PF: predicated region fallthrough
CT: control target
= control target key end

     0   :  { %12 = vsyncpa [#allocation3], 0  ;;  %s3495_s0 = inlined_call_operand.vmem [shape: f32[16,3,16], index: 0, kind: input, shape index: {}]   ;;  %s3496_s1 = inlined_call_operand.vmem [shape: f32[16,3,1], index: 1, kind: input, shape index: {}]   ;;  %s3497_s2 = inlined_call_operand.vmem [shape: f32[16,16,128], index: 2, kind: input, shape index: {}]   ;;  %s3498_s3 = inlined_call_operand.vmem [shape: f32[3,128,512], index: 3, kind: input, shape index: {}]   ;;  %s3499_s4 = inlined_call_operand.vmem [shape: f32[1,512], index: 4, kind: input, shape index: {}]   ;;  %s3500_s5 = inlined_call_operand.vmem [shape: f32[512,128], index: 5, kind: input, shape index: {}]   ;;  %s3501_s6 = inlined_call_operand.vmem [shape: f32[1,128], index: 6, kind: input, shape index: {}]   ;;  %s3502_s7 = inlined_call_operand.hbm [shape: f32[16,128], index: 7, kind: output, shape index: {}]  }
   0x1   :  { %14 = vsyncpa [#allocation3 + $0x1], 0  ;;  %s2472_s24 = smov 0   ;;  %s2474_s25 = smov 0  }
   0x2   :  { %s2476_s26 = smov 0   ;;  %s2478_s27 = smov 0  }
   0x3 LB: > { %s2493_s28 = sadd.s32 4294967295, %s2426_s27   ;;  %s2018_s29 = sadd.s32 4294967294, %s2426_s27   ;;  %s2426_s27 = sphi %s2478_s27, %s3508_s27   ;;  %s2422_s26 = sphi %s2476_s26, %s3507_s26   ;;  %s2418_s25 = sphi %s2474_s25, %s3506_s25   ;;  %s2414_s24 = sphi %s2472_s24, %s3505_s24  }
   0x4   : > { %s2497_s30 = sadd.s32 1, %s2426_s27   ;;  %s189_s8 = sadd.s32 1, %s2422_s26 }
   0x5   : > { %s186_s9 = ssub.s32 %s2426_s27, %s2497_s30  ;;  %p199_p0 = scmp.ne.s32.totalorder %s2422_s26, %s2418_s25 }
   0x6   : > { %p187_p1 = scmp.eq.s32.totalorder %s186_s9, 0  ;;  %p200_p2 = scmp.eq.s32.totalorder %s2493_s28, 1 }
   0x7   : > { %p205_p3 = scmp.ne.s32.totalorder %s2418_s25, %s2414_s24  ;;  %p206_p4 = scmp.eq.s32.totalorder %s2018_s29, 1 }
   0x8   : > { %s2508_s10 = scalar_select %p187_p1, %s2422_s26, %s189_s8  }
   0x9   : > { %p2510_p5 = por %p200_p2, %p199_p0  ;;  %p2514_p6 = por %p206_p4, %p205_p3 }
   0xa   : > { %p2021_p7 = scmp.ge.s32.totalorder %s2426_s27, 1  ;;  %p264_p8 = scmp.lt.s32.totalorder %s2426_s27, 3 }
   0xc   : > { %p265_p9 = pnand %p2021_p7, %p264_p8 }
   0xd   : > { %s2023_s13 = sshll.u32 (!%p265_p9), %s2493_s28, 3  ;;  %s304_s23 = sand.u32 (!%p265_p9), 1, %s2418_s25  }
   0xe   : > { %268 = sbr.rel (%p265_p9) target bundleno = 724 (0x2d4), region = 48  ;;  %p308_p10 = scmp.lt.s32.totalorder (!%p265_p9), %s2023_s13, 15 }
   0xf   : > { %s2022_s8 = sshll.u32 (!%p265_p9), %s304_s23, 3  ;;  %s1922_s19 = scalar_lea.sflag (!%p265_p9), [#allocation3], %s304_s23 }
  0x13   : > { %v2428_v0 = vmov 0.0   ;;  %vm2429_vm0 = vmmov 0   ;;  %s3510_s13 = smov (!%p308_p10, %s2023_s13), 15  ;;  %v2430_v1 = vmov 0   ;;  %vm350_vm1 = vcmask 130048   ;;  %v1053_v28 = vld [vmem:[%s3498_s3 + $0x1e8] sm:$0xff] }
  0x14   : > { %2266 = vmatprep.subr.mxu0 %v2428_v0  ;;  %2273 = vmatprep.subr.mxu1 %v2428_v0  ;;  %s2171_s14 = sshll.u32 %s3510_s13, 4  ;;  %s2024_s15 = sshll.u32 %s3510_s13, 2  ;;  %v1055_v29 = vld [vmem:[%s3498_s3 + $0x1f8] sm:$0xff]  ;;  %v1052_v30 = vld [vmem:[%s3498_s3 + $0x1e0] sm:$0xff]  ;;  %v1054_v31 = vld [vmem:[%s3498_s3 + $0x1f0] sm:$0xff]  ;;  %vm1065_vm2 = vcmask 1041409  }
  0x15   : > { %2270 = vmatprep.mubr.msk.f32.mxu0 %vm2429_vm0, %v2428_v0  ;;  %2277 = vmatprep.mubr.msk.f32.mxu1 %vm2429_vm0, %v2428_v0  ;;  %s2534_s18 = scalar_lea.vmem %s3497_s2, %s2171_s14  ;;  %s2541_s21 = scalar_lea.vmem %s3495_s0, %s2024_s15  ;;  %v1049_v32 = vld [vmem:[%s3498_s3 + $0x1c8] sm:$0xff]  ;;  %v1051_v33 = vld [vmem:[%s3498_s3 + $0x1d8] sm:$0xff]  ;;  %v1048_v36 = vld [vmem:[%s3498_s3 + $0x1c0] sm:$0xff]  ;;  %vm1068_vm3 = vcmask 1042434   ;;  %vm1071_vm4 = vcmask 1043459   ;;  %vm1074_vm5 = vcmask 1044484  }
  0x16   : > { %2364 = vset.pattern.permute.xlu0 %v2430_v1  ;;  %2365 = vset.pattern.permute.xlu1 %v2430_v1  ;;  %v335_v2 = vld [vmem:[%s2534_s18 + $0x8] sm:$0xff]  ;;  %v337_v3 = vld [vmem:[%s2534_s18 + $0x18] sm:$0xff]  ;;  %v334_v4 = vld [vmem:[%s2534_s18] sm:$0xff]  ;;  %s2595_s29 = scalar_lea.vmem %s3496_s1, %s2024_s15  ;;  %vm1077_vm6 = vcmask 1045509   ;;  %vm1080_vm7 = vcmask 1046534   ;;  %vm1083_vm8 = vcmask 1047559  }
  0x17   : > { %2267 = vmatpush3.msra.mxu0 %v335_v2  ;;  %2274 = vmatpush3.msra.mxu1 %v337_v3  ;;  %v336_v5 = vld [vmem:[%s2534_s18 + $0x10] sm:$0xff]  ;;  %v326_v6 = vld [vmem:[%s2541_s21] sm:$0x7]  ;;  %v327_v7 = vld [vmem:[%s2541_s21 + $0x4] sm:$0x7]  ;;  %s2168_s14 = sshll.u32 %s2493_s28, 7 }
  0x18   : > { %2268 = vmatprep.subr.mxu0 %v2428_v0  ;;  %2275 = vmatprep.subr.mxu1 %v2428_v0  ;;  %v339_v8 = vld [vmem:[%s2534_s18 + $0x28] sm:$0xff]  ;;  %v341_v9 = vld [vmem:[%s2534_s18 + $0x38] sm:$0xff]  ;;  %v338_v10 = vld [vmem:[%s2534_s18 + $0x20] sm:$0xff] }
  0x19   : > { %2269 = vmatpush3.msra.mxu0 %v334_v4  ;;  %2276 = vmatpush3.msra.mxu1 %v336_v5  ;;  %v340_v11 = vld [vmem:[%s2534_s18 + $0x30] sm:$0xff]  ;;  %v328_v12 = vld [vmem:[%s2541_s21 + $0x8] sm:$0x7]  ;;  %v329_v13 = vld [vmem:[%s2541_s21 + $0xc] sm:$0x7] }
  0x1a   : > { %2271 = vmatmul.mubr.msk.f32.vlgmr.msra.gmra.mxu0 %vm350_vm1, %v326_v6  ;;  %2278 = vmatmul.mubr.msk.f32.vlgmr.msra.gmra.mxu1 %vm350_vm1, %v327_v7  ;;  %v343_v14 = vld [vmem:[%s2534_s18 + $0x48] sm:$0xff]  ;;  %v345_v15 = vld [vmem:[%s2534_s18 + $0x58] sm:$0xff]  ;;  %v342_v16 = vld [vmem:[%s2534_s18 + $0x40] sm:$0xff] }
  0x1b   : > { %2280 = vmatprep.subr.mxu0 %v2428_v0  ;;  %2287 = vmatprep.subr.mxu1 %v2428_v0  ;;  %v344_v17 = vld [vmem:[%s2534_s18 + $0x50] sm:$0xff]  ;;  %v347_v20 = vld [vmem:[%s2534_s18 + $0x68] sm:$0xff]  ;;  %v349_v21 = vld [vmem:[%s2534_s18 + $0x78] sm:$0xff] }
  0x1c   : > { %2281 = vmatpush3.msra.mxu0 %v339_v8  ;;  %2288 = vmatpush3.msra.mxu1 %v341_v9  ;;  %v330_v18 = vld [vmem:[%s2541_s21 + $0x10] sm:$0x7]  ;;  %v331_v19 = vld [vmem:[%s2541_s21 + $0x14] sm:$0x7]  ;;  %v346_v22 = vld [vmem:[%s2534_s18 + $0x60] sm:$0xff] }
  0x1d   : > { %2282 = vmatprep.subr.mxu0 %v2428_v0  ;;  %2289 = vmatprep.subr.mxu1 %v2428_v0  ;;  %v348_v23 = vld [vmem:[%s2534_s18 + $0x70] sm:$0xff]  ;;  %v332_v24 = vld [vmem:[%s2541_s21 + $0x18] sm:$0x7]  ;;  %v333_v25 = vld [vmem:[%s2541_s21 + $0x1c] sm:$0x7]  ;;  %s1933_s18 = scalar_lea.hbm %s3502_s7, %s2168_s14  ;;  %s2431_s21 = smov [#allocation2]  }
  0x1e   : > { %2283 = vmatpush3.msra.mxu0 %v338_v10  ;;  %2284 = vmatprep.mubr.msk.f32.mxu0 %vm2429_vm0, %v2428_v0  ;;  %v936_v26 = vld [vmem:[%s2595_s29 + $0x4] sm:$0x7]  ;;  %v935_v27 = vld [vmem:[%s2595_s29] sm:$0x7]  ;;  %v937_v34 = vld [vmem:[%s2595_s29 + $0x8] sm:$0x7] }
  0x1f   : > { %2290 = vmatpush3.msra.mxu1 %v340_v11  ;;  %2291 = vmatprep.mubr.msk.f32.mxu1 %vm2429_vm0, %v2428_v0  ;;  %v938_v35 = vld [vmem:[%s2595_s29 + $0xc] sm:$0x7]  ;;  %v1050_v37 = vld [vmem:[%s3498_s3 + $0x1d0] sm:$0xff]  ;;  %v1047_v39 = vld [vmem:[%s3498_s3 + $0x1b8] sm:$0xff]  ;;  %s2370_s22 = sshll.u32 %s2431_s21, 4  ;;  %s2371_s22 = int_to_ptr.vmem [resolvable:$false] %s2370_s22 }
  0x20   : > { %2285 = vmatmul.mubr.msk.f32.vlgmr.msra.gmra.mxu0 %vm350_vm1, %v328_v12  ;;  %2292 = vmatmul.mubr.msk.f32.vlgmr.msra.gmra.mxu1 %vm350_vm1, %v329_v13  ;;  %v1045_v38 = vld [vmem:[%s3498_s3 + $0x1a8] sm:$0xff]  ;;  %v1044_v40 = vld [vmem:[%s3498_s3 + $0x1a0] sm:$0xff]  ;;  %v1046_v41 = vld [vmem:[%s3498_s3 + $0x1b0] sm:$0xff]  ;;  %s2372_s28 = scalar_lea.vmem %s2371_s22, 256 }
  0x21   : > { %2294 = vmatprep.subr.mxu0 %v2428_v0  ;;  %2301 = vmatprep.subr.mxu1 %v2428_v0  ;;  %v939_v42 = vld [vmem:[%s2595_s29 + $0x10] sm:$0x7]  ;;  %v940_v43 = vld [vmem:[%s2595_s29 + $0x14] sm:$0x7]  ;;  %v1041_v44 = vld [vmem:[%s3498_s3 + $0x188] sm:$0xff] }
  0x22   : > { %2295 = vmatpush3.msra.mxu0 %v343_v14  ;;  %2302 = vmatpush3.msra.mxu1 %v345_v15  ;;  %v1043_v45 = vld [vmem:[%s3498_s3 + $0x198] sm:$0xff]  ;;  %v1040_v46 = vld [vmem:[%s3498_s3 + $0x180] sm:$0xff]  ;;  %v1042_v47 = vld [vmem:[%s3498_s3 + $0x190] sm:$0xff] }
  0x23   : > { %2296 = vmatprep.subr.mxu0 %v2428_v0  ;;  %2303 = vmatprep.subr.mxu1 %v2428_v0  ;;  %v1037_v48 = vld [vmem:[%s3498_s3 + $0x168] sm:$0xff]  ;;  %v1039_v49 = vld [vmem:[%s3498_s3 + $0x178] sm:$0xff]  ;;  %v1036_v52 = vld [vmem:[%s3498_s3 + $0x160] sm:$0xff] }
  0x24   : > { %2297 = vmatpush3.msra.mxu0 %v342_v16  ;;  %2298 = vmatprep.mubr.msk.f32.mxu0 %vm2429_vm0, %v2428_v0  ;;  %v941_v50 = vld [vmem:[%s2595_s29 + $0x18] sm:$0x7]  ;;  %v942_v51 = vld [vmem:[%s2595_s29 + $0x1c] sm:$0x7]  ;;  %v1038_v53 = vld [vmem:[%s3498_s3 + $0x170] sm:$0xff]  ;;  %s306_s29 = scalar_lea.vmem [#allocation2], %s2022_s8 }
  0x25   : > { %2304 = vmatpush3.msra.mxu1 %v344_v17  ;;  %2305 = vmatprep.mubr.msk.f32.mxu1 %vm2429_vm0, %v2428_v0  ;;  %v1033_v54 = vld [vmem:[%s3498_s3 + $0x148] sm:$0xff]  ;;  %v1035_v55 = vld [vmem:[%s3498_s3 + $0x158] sm:$0xff]  ;;  %v1032_v56 = vld [vmem:[%s3498_s3 + $0x140] sm:$0xff]  ;;  %s1935_s15 = sshll.u32 %s306_s29, 4  ;;  %s1936_s15 = int_to_ptr.vmem [resolvable:$true] %s1935_s15 }
  0x26   : > { %2299 = vmatmul.mubr.msk.f32.vlgmr.msra.gmra.mxu0 %vm350_vm1, %v330_v18  ;;  %2306 = vmatmul.mubr.msk.f32.vlgmr.msra.gmra.mxu1 %vm350_vm1, %v331_v19  ;;  %v1034_v57 = vld [vmem:[%s3498_s3 + $0x150] sm:$0xff]  ;;  %v1029_v58 = vld [vmem:[%s3498_s3 + $0x128] sm:$0xff]  ;;  %v1031_v59 = vld [vmem:[%s3498_s3 + $0x138] sm:$0xff]  ;;  %s2366_s20 = scalar_lea.vmem %s1936_s15, 128  ;;  %p2373_p0 = scmp.lt.s32.totalorder %s1936_s15, %s2371_s22 }
  0x27   : > { %2308 = vmatprep.subr.mxu0 %v2428_v0  ;;  %2315 = vmatprep.subr.mxu1 %v2428_v0  ;;  %v1028_v60 = vld [vmem:[%s3498_s3 + $0x120] sm:$0xff]  ;;  %v1030_v61 = vld [vmem:[%s3498_s3 + $0x130] sm:$0xff]  ;;  %v1025_v62 = vld [vmem:[%s3498_s3 + $0x108] sm:$0xff]  ;;  %p2367_p11 = scmp.ne.s32.totalorder %s1936_s15, %s2366_s20  ;;  %p2374_p1 = scmp.lt.s32.totalorder %s2372_s28, %s2366_s20 }
  0x28   : > { %2309 = vmatpush3.msra.mxu0 %v347_v20  ;;  %2316 = vmatpush3.msra.mxu1 %v349_v21  ;;  %v1027_v63 = vld [vmem:[%s3498_s3 + $0x118] sm:$0xff]  ;;  %v1024_v1 = vld [vmem:[%s3498_s3 + $0x100] sm:$0xff]  ;;  %v1026_v2 = vld [vmem:[%s3498_s3 + $0x110] sm:$0xff] }
  0x29   : > { %2310 = vmatprep.subr.mxu0 %v2428_v0  ;;  %2317 = vmatprep.subr.mxu1 %v2428_v0  ;;  %v1021_v3 = vld [vmem:[%s3498_s3 + $0xe8] sm:$0xff]  ;;  %v1023_v4 = vld [vmem:[%s3498_s3 + $0xf8] sm:$0xff]  ;;  %v1020_v5 = vld [vmem:[%s3498_s3 + $0xe0] sm:$0xff]  ;;  %p2368_p12 = pnand %p2367_p11, %p2510_p5  ;;  %p2375_p2 = por %p2374_p1, %p2373_p0 }
  0x2a   : > { %2311 = vmatpush3.msra.mxu0 %v346_v22  ;;  %2312 = vmatprep.mubr.msk.f32.mxu0 %vm2429_vm0, %v2428_v0  ;;  %v1022_v6 = vld [vmem:[%s3498_s3 + $0xf0] sm:$0xff]  ;;  %v1017_v7 = vld [vmem:[%s3498_s3 + $0xc8] sm:$0xff]  ;;  %v1019_v8 = vld [vmem:[%s3498_s3 + $0xd8] sm:$0xff] }
  0x2b   : > { %2318 = vmatpush3.msra.mxu1 %v348_v23  ;;  %2319 = vmatprep.mubr.msk.f32.mxu1 %vm2429_vm0, %v2428_v0  ;;  %v1016_v9 = vld [vmem:[%s3498_s3 + $0xc0] sm:$0xff]  ;;  %v1018_v10 = vld [vmem:[%s3498_s3 + $0xd0] sm:$0xff]  ;;  %v1013_v11 = vld [vmem:[%s3498_s3 + $0xa8] sm:$0xff]  ;;  %p2369_p13 = pneg %p2368_p12 }
  0x2c   : > { %2313 = vmatmul.mubr.msk.f32.vlgmr.msra.gmra.mxu0 %vm350_vm1, %v332_v24  ;;  %2320 = vmatmul.mubr.msk.f32.vlgmr.msra.gmra.mxu1 %vm350_vm1, %v333_v25  ;;  %v1015_v12 = vld [vmem:[%s3498_s3 + $0xb8] sm:$0xff]  ;;  %v1012_v13 = vld [vmem:[%s3498_s3 + $0xa0] sm:$0xff]  ;;  %v1014_v14 = vld [vmem:[%s3498_s3 + $0xb0] sm:$0xff] }
  0x2d   : > { %950 = vperm.xlu0 %2364, %v936_v26   ;;  %945 = vperm.xlu1 %2365, %v935_v27   ;;  %v1009_v15 = vld [vmem:[%s3498_s3 + $0x88] sm:$0xff]  ;;  %v1011_v16 = vld [vmem:[%s3498_s3 + $0x98] sm:$0xff]  ;;  %v1008_v17 = vld [vmem:[%s3498_s3 + $0x80] sm:$0xff]  ;;  %p2376_p3 = pnand %p2375_p2, %p2369_p13 }
  0x2e   : > { %1086 = vmatprep.subr.mxu0 %v1053_v28  ;;  %1157 = vmatprep.subr.mxu1 %v1055_v29  ;;  %v1010_v18 = vld [vmem:[%s3498_s3 + $0x90] sm:$0xff]  ;;  %v1005_v19 = vld [vmem:[%s3498_s3 + $0x68] sm:$0xff]  ;;  %v1007_v20 = vld [vmem:[%s3498_s3 + $0x78] sm:$0xff] }
  0x2f   : > { %1087 = vmatpush1.msra.mxu0 %v1052_v30  ;;  %1158 = vmatpush1.msra.mxu1 %v1054_v31  ;;  %v1004_v21 = vld [vmem:[%s3498_s3 + $0x60] sm:$0xff]  ;;  %v1006_v22 = vld [vmem:[%s3498_s3 + $0x70] sm:$0xff]  ;;  %v1001_v23 = vld [vmem:[%s3498_s3 + $0x48] sm:$0xff] }
  0x30   : > { %1088 = vmatprep.subr.mxu0 %v1049_v32  ;;  %1159 = vmatprep.subr.mxu1 %v1051_v33  ;;  %v1003_v24 = vld [vmem:[%s3498_s3 + $0x58] sm:$0xff]  ;;  %v1000_v25 = vld [vmem:[%s3498_s3 + $0x40] sm:$0xff]  ;;  %v1002_v26 = vld [vmem:[%s3498_s3 + $0x50] sm:$0xff] }
  0x31   : > { %955 = vperm.xlu0 %2364, %v937_v34   ;;  %960 = vperm.xlu1 %2365, %v938_v35   ;;  %v997_v27 = vld [vmem:[%s3498_s3 + $0x28] sm:$0xff]  ;;  %v999_v28 = vld [vmem:[%s3498_s3 + $0x38] sm:$0xff]  ;;  %v996_v29 = vld [vmem:[%s3498_s3 + $0x20] sm:$0xff] }
  0x32   : > { %1089 = vmatpush1.msra.mxu0 %v1048_v36  ;;  %1160 = vmatpush1.msra.mxu1 %v1050_v37  ;;  %v998_v30 = vld [vmem:[%s3498_s3 + $0x30] sm:$0xff]  ;;  %v993_v31 = vld [vmem:[%s3498_s3 + $0x8] sm:$0xff]  ;;  %v995_v32 = vld [vmem:[%s3498_s3 + $0x18] sm:$0xff] }
  0x33   : > { %1090 = vmatprep.subr.mxu0 %v1045_v38  ;;  %1161 = vmatprep.subr.mxu1 %v1047_v39  ;;  %v992_v33 = vld [vmem:[%s3498_s3] sm:$0xff]  ;;  %v994_v34 = vld [vmem:[%s3498_s3 + $0x10] sm:$0xff]  ;;  %v2099_v35 = vld [vmem:[%s3498_s3 + $0x3e8] sm:$0xff] }
  0x34   : > { %1091 = vmatpush1.msra.mxu0 %v1044_v40  ;;  %1162 = vmatpush1.msra.mxu1 %v1046_v41  ;;  %v2101_v36 = vld [vmem:[%s3498_s3 + $0x3f8] sm:$0xff] }
  0x35   : > { %965 = vperm.xlu0 %2364, %v939_v42   ;;  %970 = vperm.xlu1 %2365, %v940_v43  }
  0x36   : > { %1092 = vmatprep.subr.mxu0 %v1041_v44  ;;  %1163 = vmatprep.subr.mxu1 %v1043_v45 }
  0x37   : > { %1093 = vmatpush1.msra.mxu0 %v1040_v46  ;;  %1164 = vmatpush1.msra.mxu1 %v1042_v47 }
  0x38   : > { %1094 = vmatprep.subr.mxu0 %v1037_v48  ;;  %1165 = vmatprep.subr.mxu1 %v1039_v49 }
  0x39   : > { %975 = vperm.xlu0 %2364, %v941_v50   ;;  %980 = vperm.xlu1 %2365, %v942_v51  }
  0x3a   : > { %1095 = vmatpush1.msra.mxu0 %v1036_v52  ;;  %1166 = vmatpush1.msra.mxu1 %v1038_v53 }
  0x3b   : > { %1096 = vmatprep.subr.mxu0 %v1033_v54  ;;  %1167 = vmatprep.subr.mxu1 %v1035_v55 }
  0x3c   : > { %1097 = vmatpush1.msra.mxu0 %v1032_v56  ;;  %1168 = vmatpush1.msra.mxu1 %v1034_v57 }
  0x3d   : > { %1098 = vmatprep.subr.mxu0 %v1029_v58  ;;  %1169 = vmatprep.subr.mxu1 %v1031_v59 }
  0x3e   : > { %1099 = vmatpush1.msra.mxu0 %v1028_v60  ;;  %1170 = vmatpush1.msra.mxu1 %v1030_v61 }
  0x3f   : > { %1150 = vmatprep.mubr.f32.mxu0 %v2428_v0  ;;  %1221 = vmatprep.mubr.f32.mxu1 %v2428_v0 }
  0x40   : > { %1100 = vmatprep.subr.mxu0 %v1025_v62  ;;  %1171 = vmatprep.subr.mxu1 %v1027_v63 }
  0x41   : > { %1101 = vmatpush1.msra.mxu0 %v1024_v1  ;;  %1172 = vmatpush1.msra.mxu1 %v1026_v2 }
  0x42   : > { %1102 = vmatprep.subr.mxu0 %v1021_v3  ;;  %1173 = vmatprep.subr.mxu1 %v1023_v4 }
  0x43   : > { %1103 = vmatpush1.msra.mxu0 %v1020_v5  ;;  %1174 = vmatpush1.msra.mxu1 %v1022_v6 }
  0x44   : > { %1104 = vmatprep.subr.mxu0 %v1017_v7  ;;  %1175 = vmatprep.subr.mxu1 %v1019_v8 }
  0x45   : > { %1105 = vmatpush1.msra.mxu0 %v1016_v9  ;;  %1176 = vmatpush1.msra.mxu1 %v1018_v10 }
  0x46   : > { %1106 = vmatprep.subr.mxu0 %v1013_v11  ;;  %1177 = vmatprep.subr.mxu1 %v1015_v12 }
  0x47   : > { %1107 = vmatpush1.msra.mxu0 %v1012_v13  ;;  %1178 = vmatpush1.msra.mxu1 %v1014_v14 }
  0x48   : > { %1108 = vmatprep.subr.mxu0 %v1009_v15  ;;  %1179 = vmatprep.subr.mxu1 %v1011_v16 }
  0x49   : > { %1109 = vmatpush1.msra.mxu0 %v1008_v17  ;;  %1180 = vmatpush1.msra.mxu1 %v1010_v18 }
  0x4a   : > { %1110 = vmatprep.subr.mxu0 %v1005_v19  ;;  %1181 = vmatprep.subr.mxu1 %v1007_v20 }
  0x4b   : > { %1111 = vmatpush1.msra.mxu0 %v1004_v21  ;;  %1182 = vmatpush1.msra.mxu1 %v1006_v22 }
  0x4c   : > { %1112 = vmatprep.subr.mxu0 %v1001_v23  ;;  %1183 = vmatprep.subr.mxu1 %v1003_v24 }
  0x4d   : > { %1113 = vmatpush1.msra.mxu0 %v1000_v25  ;;  %1184 = vmatpush1.msra.mxu1 %v1002_v26 }
  0x4e   : > { %1114 = vmatprep.subr.mxu0 %v997_v27  ;;  %1185 = vmatprep.subr.mxu1 %v999_v28 }
  0x4f   : > { %1115 = vmatpush1.msra.mxu0 %v996_v29  ;;  %1186 = vmatpush1.msra.mxu1 %v998_v30 }
  0x50   : > { %1116 = vmatprep.subr.mxu0 %v993_v31  ;;  %1187 = vmatprep.subr.mxu1 %v995_v32  ;;  %v2098_v31 = vld [vmem:[%s3498_s3 + $0x3e0] sm:$0xff]  ;;  %v2100_v32 = vld [vmem:[%s3498_s3 + $0x3f0] sm:$0xff] }
  0x51   : > { %1117 = vmatpush1.msra.mxu0 %v992_v33  ;;  %1188 = vmatpush1.msra.mxu1 %v994_v34 }
  0x52   : > { %1333 = vmatprep.subr.mxu0 %v2099_v35  ;;  %1404 = vmatprep.subr.mxu1 %v2101_v36  ;;  %v2095_v35 = vld [vmem:[%s3498_s3 + $0x3c8] sm:$0xff]  ;;  %v2097_v36 = vld [vmem:[%s3498_s3 + $0x3d8] sm:$0xff] }
  0xa8   : > { %v951_v37 = vpop.permute.xlu0 %950  ;;  %v946_v38 = vpop.permute.xlu1 %945 }
  0xac   : > { %v956_v47 = vpop.permute.xlu0 %955  ;;  %v961_v48 = vpop.permute.xlu1 %960 }
  0xb0   : > { %v966_v59 = vpop.permute.xlu0 %965  ;;  %v971_v60 = vpop.permute.xlu1 %970 }
  0xb4   : > { %v976_v12 = vpop.permute.xlu0 %975  ;;  %v981_v13 = vpop.permute.xlu1 %980 }
  0xda   : > { %v420_v39 = vpop.f32.mrf.mxu0  ;;  %v493_v40 = vpop.f32.mrf.mxu1 }
  0xdb   : > { %v2816_v41 = vmul.f32 %v946_v38, %v420_v39  ;;  %v2818_v42 = vmul.f32 %v951_v37, %v493_v40  ;;  %v2094_v38 = vld [vmem:[%s3498_s3 + $0x3c0] sm:$0xff]  ;;  %v2096_v39 = vld [vmem:[%s3498_s3 + $0x3d0] sm:$0xff]  ;;  %v2091_v40 = vld [vmem:[%s3498_s3 + $0x3a8] sm:$0xff] }
  0xdc   : > { %v2272_v43 = vpop.f32.mrf.mxu0  ;;  %v2279_v44 = vpop.f32.mrf.mxu1 }
  0xdd   : > { %v1544_v45 = vrot.slane %v2816_v41, 2  ;;  %v1545_v46 = vrot.slane %v2818_v42, 1  ;;  %v1064_v57 = vrot.slane %v2818_v42, 7  ;;  %v2093_v43 = vld [vmem:[%s3498_s3 + $0x3b8] sm:$0xff]  ;;  %v2090_v44 = vld [vmem:[%s3498_s3 + $0x3a0] sm:$0xff] }
  0xdf   : > { %v1546_v49 = vsel %vm1065_vm2, %v1545_v46, %v1544_v45  ;;  %v1066_v4 = vsel %vm1065_vm2, %v1064_v57, %v2816_v41  ;;  %v2092_v45 = vld [vmem:[%s3498_s3 + $0x3b0] sm:$0xff]  ;;  %v2087_v46 = vld [vmem:[%s3498_s3 + $0x388] sm:$0xff]  ;;  %v2081_v57 = vld [vmem:[%s3498_s3 + $0x358] sm:$0xff] }
  0xe0   : > { %v566_v50 = vpop.f32.mrf.mxu0  ;;  %v639_v51 = vpop.f32.mrf.mxu1 }
  0xe1   : > { %v2823_v52 = vmul.f32 %v956_v47, %v566_v50  ;;  %v2825_v53 = vmul.f32 %v961_v48, %v639_v51  ;;  %v2089_v47 = vld [vmem:[%s3498_s3 + $0x398] sm:$0xff]  ;;  %v2086_v48 = vld [vmem:[%s3498_s3 + $0x380] sm:$0xff]  ;;  %v2083_v50 = vld [vmem:[%s3498_s3 + $0x368] sm:$0xff] }
  0xe2   : > { %v2286_v54 = vpop.f32.mrf.mxu0  ;;  %v2293_v55 = vpop.f32.mrf.mxu1  ;;  %v2085_v51 = vld [vmem:[%s3498_s3 + $0x378] sm:$0xff] }
  0xe3   : > { %v1547_v56 = vsel %vm1068_vm3, %v2823_v52, %v1546_v49  ;;  %v1548_v58 = vrot.slane %v2825_v53, 7  ;;  %v1067_v61 = vrot.slane %v2823_v52, 6  ;;  %v1070_v5 = vrot.slane %v2825_v53, 5  ;;  %v2088_v49 = vld [vmem:[%s3498_s3 + $0x390] sm:$0xff]  ;;  %v2082_v54 = vld [vmem:[%s3498_s3 + $0x360] sm:$0xff] }
  0xe4   : > { %v2084_v55 = vld [vmem:[%s3498_s3 + $0x370] sm:$0xff] }
  0xe5   : > { %v1549_v62 = vsel %vm1071_vm4, %v1548_v58, %v1547_v56  ;;  %v1069_v8 = vsel %vm1068_vm3, %v1067_v61, %v1066_v4  ;;  %v2079_v56 = vld [vmem:[%s3498_s3 + $0x348] sm:$0xff]  ;;  %v2078_v58 = vld [vmem:[%s3498_s3 + $0x340] sm:$0xff]  ;;  %v2077_v61 = vld [vmem:[%s3498_s3 + $0x338] sm:$0xff] }
  0xe6   : > { %v712_v63 = vpop.f32.mrf.mxu0  ;;  %v785_v1 = vpop.f32.mrf.mxu1  ;;  %v1072_v15 = vsel %vm1071_vm4, %v1070_v5, %v1069_v8  ;;  %v2073_v4 = vld [vmem:[%s3498_s3 + $0x318] sm:$0xff]  ;;  %v2070_v5 = vld [vmem:[%s3498_s3 + $0x300] sm:$0xff] }
  0xe7   : > { %v2833_v2 = vmul.f32 %v966_v59, %v712_v63  ;;  %v2835_v3 = vmul.f32 %v971_v60, %v785_v1  ;;  %v2080_v59 = vld [vmem:[%s3498_s3 + $0x350] sm:$0xff]  ;;  %v2075_v60 = vld [vmem:[%s3498_s3 + $0x328] sm:$0xff]  ;;  %v2069_v8 = vld [vmem:[%s3498_s3 + $0x2f8] sm:$0xff] }
  0xe8   : > { %v2300_v6 = vpop.f32.mrf.mxu0  ;;  %v2307_v7 = vpop.f32.mrf.mxu1  ;;  %v2076_v63 = vld [vmem:[%s3498_s3 + $0x330] sm:$0xff]  ;;  %v2071_v1 = vld [vmem:[%s3498_s3 + $0x308] sm:$0xff] }
  0xe9   : > { %v1073_v9 = vrot.slane %v2833_v2, 4  ;;  %v1550_v10 = vrot.slane %v2833_v2, 6  ;;  %v1552_v11 = vrot.slane %v2835_v3, 5  ;;  %v1076_v16 = vrot.slane %v2835_v3, 3  ;;  %v2072_v6 = vld [vmem:[%s3498_s3 + $0x310] sm:$0xff]  ;;  %v2067_v7 = vld [vmem:[%s3498_s3 + $0x2e8] sm:$0xff] }
  0xeb   : > { %v1551_v14 = vsel %vm1074_vm5, %v1550_v10, %v1549_v62  ;;  %v1075_v20 = vsel %vm1074_vm5, %v1073_v9, %v1072_v15  ;;  %v2074_v62 = vld [vmem:[%s3498_s3 + $0x320] sm:$0xff]  ;;  %v2068_v10 = vld [vmem:[%s3498_s3 + $0x2f0] sm:$0xff] }
  0xec   : > { %v858_v17 = vpop.f32.mrf.mxu0  ;;  %v931_v18 = vpop.f32.mrf.mxu1  ;;  %v1553_v19 = vsel %vm1077_vm6, %v1552_v11, %v1551_v14  ;;  %v1078_v29 = vsel %vm1077_vm6, %v1076_v16, %v1075_v20  ;;  %v2066_v9 = vld [vmem:[%s3498_s3 + $0x2e0] sm:$0xff]  ;;  %v2063_v11 = vld [vmem:[%s3498_s3 + $0x2c8] sm:$0xff]  ;;  %v2064_v15 = vld [vmem:[%s3498_s3 + $0x2d0] sm:$0xff]  ;;  %v1320_v16 = vrot.slane %v2823_v52, 7 }
  0xed   : > { %v2849_v21 = vmul.f32 %v976_v12, %v858_v17  ;;  %v2851_v22 = vmul.f32 %v981_v13, %v931_v18  ;;  %v2065_v12 = vld [vmem:[%s3498_s3 + $0x2d8] sm:$0xff]  ;;  %v1318_v13 = vrot.slane %v2816_v41, 1  ;;  %v2062_v14 = vld [vmem:[%s3498_s3 + $0x2c0] sm:$0xff]  ;;  %v2059_v17 = vld [vmem:[%s3498_s3 + $0x2a8] sm:$0xff] }
  0xee   : > { %v2314_v23 = vpop.f32.mrf.mxu0  ;;  %v2321_v24 = vpop.f32.mrf.mxu1  ;;  %v2061_v41 = vld [vmem:[%s3498_s3 + $0x2b8] sm:$0xff]  ;;  %v2058_v18 = vld [vmem:[%s3498_s3 + $0x2a0] sm:$0xff]  ;;  %v2060_v52 = vld [vmem:[%s3498_s3 + $0x2b0] sm:$0xff] }
  0xef   : > { %v1079_v25 = vrot.slane %v2849_v21, 2  ;;  %v1554_v26 = vrot.slane %v2849_v21, 4  ;;  %v1082_v27 = vrot.slane %v2851_v22, 1  ;;  %v1556_v28 = vrot.slane %v2851_v22, 3  ;;  %v2057_v20 = vld [vmem:[%s3498_s3 + $0x298] sm:$0xff] }
  0xf0   : > { %v1319_v23 = vsel %vm1065_vm2, %v2818_v42, %v1318_v13  ;;  %v1322_v24 = vrot.slane %v2825_v53, 6  ;;  %v2051_v42 = vld [vmem:[%s3498_s3 + $0x268] sm:$0xff]  ;;  %v2053_v53 = vld [vmem:[%s3498_s3 + $0x278] sm:$0xff]  ;;  %v2142_v13 = vld [vmem:[%s3498_s3 + $0x540] sm:$0xff] }
  0xf1   : > { %v1081_v30 = vsel %vm1080_vm7, %v1079_v25, %v1078_v29  ;;  %v1555_v33 = vsel %vm1080_vm7, %v1554_v26, %v1553_v19  ;;  %v2055_v19 = vld [vmem:[%s3498_s3 + $0x288] sm:$0xff]  ;;  %v2054_v25 = vld [vmem:[%s3498_s3 + $0x280] sm:$0xff]  ;;  %v2056_v26 = vld [vmem:[%s3498_s3 + $0x290] sm:$0xff] }
  0xf2   : > { %v1084_v34 = vsel %vm1083_vm8, %v1082_v27, %v1081_v30  ;;  %v2874_v37 = vsel %vm1083_vm8, %v1556_v28, %v1555_v33  ;;  %v1321_v27 = vsel %vm1068_vm3, %v1320_v16, %v1319_v23  ;;  %v1324_v28 = vrot.slane %v2833_v2, 5  ;;  %v2050_v29 = vld [vmem:[%s3498_s3 + $0x260] sm:$0xff]  ;;  %v2052_v2 = vld [vmem:[%s3498_s3 + $0x270] sm:$0xff]  ;;  %v2047_v30 = vld [vmem:[%s3498_s3 + $0x248] sm:$0xff] }
  0xf3   : > { %1151 = vmatmul.mubr.f32.vlgmr.msra.gmra.mxu0 %v1084_v34  ;;  %1222 = vmatmul.mubr.f32.vlgmr.msra.gmra.mxu1 %v1084_v34  ;;  %v1326_v33 = vrot.slane %v2835_v3, 4  ;;  %v2046_v34 = vld [vmem:[%s3498_s3 + $0x240] sm:$0xff]  ;;  %v2043_v3 = vld [vmem:[%s3498_s3 + $0x228] sm:$0xff]  ;;  %v2141_v16 = vld [vmem:[%s3498_s3 + $0x538] sm:$0xff] }
  0xf4   : > { %1334 = vmatpush1.msra.mxu0 %v2098_v31  ;;  %1405 = vmatpush1.msra.mxu1 %v2100_v32  ;;  %v2049_v31 = vld [vmem:[%s3498_s3 + $0x258] sm:$0xff]  ;;  %v1323_v32 = vsel %vm1071_vm4, %v1322_v24, %v1321_v27  ;;  %v2131_v23 = vld [vmem:[%s3498_s3 + $0x4e8] sm:$0xff] }
  0xf5   : > { %1335 = vmatprep.subr.mxu0 %v2095_v35  ;;  %1406 = vmatprep.subr.mxu1 %v2097_v36  ;;  %v2048_v35 = vld [vmem:[%s3498_s3 + $0x250] sm:$0xff]  ;;  %v1325_v36 = vsel %vm1074_vm5, %v1324_v28, %v1323_v32  ;;  %v2133_v24 = vld [vmem:[%s3498_s3 + $0x4f8] sm:$0xff]  ;;  %v2127_v27 = vld [vmem:[%s3498_s3 + $0x4c8] sm:$0xff] }
  0xf6   : > { %1336 = vmatpush1.msra.mxu0 %v2094_v38  ;;  %1407 = vmatpush1.msra.mxu1 %v2096_v39  ;;  %v1328_v38 = vrot.slane %v2849_v21, 3  ;;  %v2045_v39 = vld [vmem:[%s3498_s3 + $0x238] sm:$0xff]  ;;  %v2044_v21 = vld [vmem:[%s3498_s3 + $0x230] sm:$0xff]  ;;  %v2119_v32 = vld [vmem:[%s3498_s3 + $0x488] sm:$0xff] }
  0xf7   : > { %1337 = vmatprep.subr.mxu0 %v2091_v40  ;;  %1408 = vmatprep.subr.mxu1 %v2093_v43  ;;  %v2042_v40 = vld [vmem:[%s3498_s3 + $0x220] sm:$0xff]  ;;  %v2039_v43 = vld [vmem:[%s3498_s3 + $0x208] sm:$0xff]  ;;  %v2129_v28 = vld [vmem:[%s3498_s3 + $0x4d8] sm:$0xff] }
  0xf8   : > { %1338 = vmatpush1.msra.mxu0 %v2090_v44  ;;  %1409 = vmatpush1.msra.mxu1 %v2092_v45  ;;  %v2041_v44 = vld [vmem:[%s3498_s3 + $0x218] sm:$0xff]  ;;  %v1330_v45 = vrot.slane %v2851_v22, 2  ;;  %v2163_v22 = vld [vmem:[%s3498_s3 + $0x5e8] sm:$0xff] }
  0xf9   : > { %1339 = vmatprep.subr.mxu0 %v2087_v46  ;;  %1410 = vmatprep.subr.mxu1 %v2089_v47  ;;  %v2038_v46 = vld [vmem:[%s3498_s3 + $0x200] sm:$0xff]  ;;  %v1327_v47 = vsel %vm1077_vm6, %v1326_v33, %v1325_v36  ;;  %v2121_v33 = vld [vmem:[%s3498_s3 + $0x498] sm:$0xff]  ;;  %v2115_v36 = vld [vmem:[%s3498_s3 + $0x468] sm:$0xff] }
  0xfa   : > { %1340 = vmatpush1.msra.mxu0 %v2086_v48  ;;  %1411 = vmatpush1.msra.mxu1 %v2088_v49  ;;  %v2040_v48 = vld [vmem:[%s3498_s3 + $0x210] sm:$0xff]  ;;  %v1329_v49 = vsel %vm1080_vm7, %v1328_v38, %v1327_v47  ;;  %v2117_v38 = vld [vmem:[%s3498_s3 + $0x478] sm:$0xff]  ;;  %v2106_v47 = vld [vmem:[%s3498_s3 + $0x420] sm:$0xff] }
  0xfb   : > { %1341 = vmatprep.subr.mxu0 %v2083_v50  ;;  %1412 = vmatprep.subr.mxu1 %v2085_v51  ;;  %v2165_v50 = vld [vmem:[%s3498_s3 + $0x5f8] sm:$0xff]  ;;  %v1331_v51 = vsel %vm1083_vm8, %v1330_v45, %v1329_v49  ;;  %v2107_v45 = vld [vmem:[%s3498_s3 + $0x428] sm:$0xff] }
  0xfc   : > { %1342 = vmatpush1.msra.mxu0 %v2082_v54  ;;  %1413 = vmatpush1.msra.mxu1 %v2084_v55  ;;  %v2162_v54 = vld [vmem:[%s3498_s3 + $0x5e0] sm:$0xff]  ;;  %v2164_v55 = vld [vmem:[%s3498_s3 + $0x5f0] sm:$0xff]  ;;  %v2103_v49 = vld [vmem:[%s3498_s3 + $0x408] sm:$0xff] }
  0xfd   : > { %1343 = vmatprep.subr.mxu0 %v2079_v56  ;;  %1414 = vmatprep.subr.mxu1 %v2081_v57  ;;  %v2159_v56 = vld [vmem:[%s3498_s3 + $0x5c8] sm:$0xff]  ;;  %v2161_v57 = vld [vmem:[%s3498_s3 + $0x5d8] sm:$0xff] }
  0xfe   : > { %1344 = vmatpush1.msra.mxu0 %v2078_v58  ;;  %1415 = vmatpush1.msra.mxu1 %v2080_v59  ;;  %v2158_v58 = vld [vmem:[%s3498_s3 + $0x5c0] sm:$0xff]  ;;  %v2160_v59 = vld [vmem:[%s3498_s3 + $0x5d0] sm:$0xff] }
  0xff   : > { %1345 = vmatprep.subr.mxu0 %v2075_v60  ;;  %1416 = vmatprep.subr.mxu1 %v2077_v61  ;;  %v2155_v60 = vld [vmem:[%s3498_s3 + $0x5a8] sm:$0xff]  ;;  %v2157_v61 = vld [vmem:[%s3498_s3 + $0x5b8] sm:$0xff] }
 0x100   : > { %1346 = vmatpush1.msra.mxu0 %v2074_v62  ;;  %1417 = vmatpush1.msra.mxu1 %v2076_v63  ;;  %v2154_v62 = vld [vmem:[%s3498_s3 + $0x5a0] sm:$0xff]  ;;  %v2156_v63 = vld [vmem:[%s3498_s3 + $0x5b0] sm:$0xff] }
 0x101   : > { %1347 = vmatprep.subr.mxu0 %v2071_v1  ;;  %1418 = vmatprep.subr.mxu1 %v2073_v4  ;;  %v2151_v1 = vld [vmem:[%s3498_s3 + $0x588] sm:$0xff]  ;;  %v2153_v4 = vld [vmem:[%s3498_s3 + $0x598] sm:$0xff] }
 0x102   : > { %1348 = vmatpush1.msra.mxu0 %v2070_v5  ;;  %1419 = vmatpush1.msra.mxu1 %v2072_v6  ;;  %v2150_v5 = vld [vmem:[%s3498_s3 + $0x580] sm:$0xff]  ;;  %v2152_v6 = vld [vmem:[%s3498_s3 + $0x590] sm:$0xff] }
 0x103   : > { %1349 = vmatprep.subr.mxu0 %v2067_v7  ;;  %1420 = vmatprep.subr.mxu1 %v2069_v8  ;;  %v2147_v7 = vld [vmem:[%s3498_s3 + $0x568] sm:$0xff]  ;;  %v2149_v8 = vld [vmem:[%s3498_s3 + $0x578] sm:$0xff] }
 0x104   : > { %1350 = vmatpush1.msra.mxu0 %v2066_v9  ;;  %1421 = vmatpush1.msra.mxu1 %v2068_v10  ;;  %v2146_v9 = vld [vmem:[%s3498_s3 + $0x560] sm:$0xff]  ;;  %v2148_v10 = vld [vmem:[%s3498_s3 + $0x570] sm:$0xff] }
 0x105   : > { %1351 = vmatprep.subr.mxu0 %v2063_v11  ;;  %1422 = vmatprep.subr.mxu1 %v2065_v12  ;;  %v2143_v11 = vld [vmem:[%s3498_s3 + $0x548] sm:$0xff]  ;;  %v2145_v12 = vld [vmem:[%s3498_s3 + $0x558] sm:$0xff] }
 0x106   : > { %1352 = vmatpush1.msra.mxu0 %v2062_v14  ;;  %1423 = vmatpush1.msra.mxu1 %v2064_v15  ;;  %v2144_v14 = vld [vmem:[%s3498_s3 + $0x550] sm:$0xff]  ;;  %v2139_v15 = vld [vmem:[%s3498_s3 + $0x528] sm:$0xff] }
 0x107   : > { %1353 = vmatprep.subr.mxu0 %v2059_v17  ;;  %1424 = vmatprep.subr.mxu1 %v2061_v41  ;;  %v2138_v17 = vld [vmem:[%s3498_s3 + $0x520] sm:$0xff]  ;;  %v2140_v41 = vld [vmem:[%s3498_s3 + $0x530] sm:$0xff] }
 0x108   : > { %1354 = vmatpush1.msra.mxu0 %v2058_v18  ;;  %1425 = vmatpush1.msra.mxu1 %v2060_v52  ;;  %v2135_v18 = vld [vmem:[%s3498_s3 + $0x508] sm:$0xff]  ;;  %v2137_v52 = vld [vmem:[%s3498_s3 + $0x518] sm:$0xff] }
 0x109   : > { %1355 = vmatprep.subr.mxu0 %v2055_v19  ;;  %1426 = vmatprep.subr.mxu1 %v2057_v20  ;;  %v2134_v19 = vld [vmem:[%s3498_s3 + $0x500] sm:$0xff]  ;;  %v2136_v20 = vld [vmem:[%s3498_s3 + $0x510] sm:$0xff] }
 0x10a   : > { %1356 = vmatpush1.msra.mxu0 %v2054_v25  ;;  %1427 = vmatpush1.msra.mxu1 %v2056_v26  ;;  %v2130_v25 = vld [vmem:[%s3498_s3 + $0x4e0] sm:$0xff]  ;;  %v2132_v26 = vld [vmem:[%s3498_s3 + $0x4f0] sm:$0xff] }
 0x10b   : > { %1357 = vmatprep.subr.mxu0 %v2051_v42  ;;  %1428 = vmatprep.subr.mxu1 %v2053_v53  ;;  %v2126_v42 = vld [vmem:[%s3498_s3 + $0x4c0] sm:$0xff]  ;;  %v2128_v53 = vld [vmem:[%s3498_s3 + $0x4d0] sm:$0xff] }
 0x10c   : > { %1358 = vmatpush1.msra.mxu0 %v2050_v29  ;;  %1429 = vmatpush1.msra.mxu1 %v2052_v2  ;;  %v2123_v29 = vld [vmem:[%s3498_s3 + $0x4a8] sm:$0xff]  ;;  %v2125_v2 = vld [vmem:[%s3498_s3 + $0x4b8] sm:$0xff] }
 0x10d   : > { %1359 = vmatprep.subr.mxu0 %v2047_v30  ;;  %1430 = vmatprep.subr.mxu1 %v2049_v31  ;;  %v2122_v30 = vld [vmem:[%s3498_s3 + $0x4a0] sm:$0xff]  ;;  %v2124_v31 = vld [vmem:[%s3498_s3 + $0x4b0] sm:$0xff] }
 0x10e   : > { %1360 = vmatpush1.msra.mxu0 %v2046_v34  ;;  %1431 = vmatpush1.msra.mxu1 %v2048_v35  ;;  %v2118_v34 = vld [vmem:[%s3498_s3 + $0x480] sm:$0xff]  ;;  %v2120_v35 = vld [vmem:[%s3498_s3 + $0x490] sm:$0xff] }
 0x10f   : > { %1361 = vmatprep.subr.mxu0 %v2043_v3  ;;  %1432 = vmatprep.subr.mxu1 %v2045_v39  ;;  %v2114_v3 = vld [vmem:[%s3498_s3 + $0x460] sm:$0xff]  ;;  %v2116_v39 = vld [vmem:[%s3498_s3 + $0x470] sm:$0xff] }
 0x110   : > { %1362 = vmatpush1.msra.mxu0 %v2042_v40  ;;  %1433 = vmatpush1.msra.mxu1 %v2044_v21  ;;  %v2111_v40 = vld [vmem:[%s3498_s3 + $0x448] sm:$0xff]  ;;  %v2113_v21 = vld [vmem:[%s3498_s3 + $0x458] sm:$0xff] }
 0x111   : > { %1363 = vmatprep.subr.mxu0 %v2039_v43  ;;  %1434 = vmatprep.subr.mxu1 %v2041_v44  ;;  %v2110_v43 = vld [vmem:[%s3498_s3 + $0x440] sm:$0xff]  ;;  %v2112_v44 = vld [vmem:[%s3498_s3 + $0x450] sm:$0xff] }
 0x112   : > { %1364 = vmatpush1.msra.mxu0 %v2038_v46  ;;  %1397 = vmatprep.mubr.f32.mxu0 %v2428_v0  ;;  %v2109_v46 = vld [vmem:[%s3498_s3 + $0x438] sm:$0xff] }
 0x113   : > { %1435 = vmatpush1.msra.mxu1 %v2040_v48  ;;  %1468 = vmatprep.mubr.f32.mxu1 %v2428_v0  ;;  %v2108_v48 = vld [vmem:[%s3498_s3 + $0x430] sm:$0xff] }
 0x114   : > { %1398 = vmatmul.mubr.f32.vlgmr.msra.gmra.mxu0 %v1331_v51  ;;  %1469 = vmatmul.mubr.f32.vlgmr.msra.gmra.mxu1 %v1331_v51  ;;  %v2104_v51 = vld [vmem:[%s3498_s3 + $0x410] sm:$0xff] }
 0x115   : > { %1559 = vmatprep.subr.mxu0 %v2163_v22  ;;  %1630 = vmatprep.subr.mxu1 %v2165_v50  ;;  %v2105_v22 = vld [vmem:[%s3498_s3 + $0x418] sm:$0xff]  ;;  %v2102_v50 = vld [vmem:[%s3498_s3 + $0x400] sm:$0xff] }
 0x116   : > { %1560 = vmatpush1.msra.mxu0 %v2162_v54  ;;  %1631 = vmatpush1.msra.mxu1 %v2164_v55  ;;  %v1740_v54 = vld [vmem:[%s3500_s5 + $0xf8] sm:$0xff] }
 0x117   : > { %1561 = vmatprep.subr.mxu0 %v2159_v56  ;;  %1632 = vmatprep.subr.mxu1 %v2161_v57  ;;  %v1772_v55 = vld [vmem:[%s3500_s5 + $0x1f8] sm:$0xff]  ;;  %v1771_v57 = vld [vmem:[%s3500_s5 + $0x1f0] sm:$0xff] }
 0x118   : > { %1562 = vmatpush1.msra.mxu0 %v2158_v58  ;;  %1633 = vmatpush1.msra.mxu1 %v2160_v59  ;;  %v1724_v56 = vld [vmem:[%s3500_s5 + $0x78] sm:$0xff]  ;;  %v1723_v58 = vld [vmem:[%s3500_s5 + $0x70] sm:$0xff] }
 0x119   : > { %1563 = vmatprep.subr.mxu0 %v2155_v60  ;;  %1634 = vmatprep.subr.mxu1 %v2157_v61  ;;  %v1755_v59 = vld [vmem:[%s3500_s5 + $0x170] sm:$0xff]  ;;  %v1738_v60 = vld [vmem:[%s3500_s5 + $0xe8] sm:$0xff] }
 0x11a   : > { %1564 = vmatpush1.msra.mxu0 %v2154_v62  ;;  %1635 = vmatpush1.msra.mxu1 %v2156_v63  ;;  %v1770_v61 = vld [vmem:[%s3500_s5 + $0x1e8] sm:$0xff] }
 0x11b   : > { %1565 = vmatprep.subr.mxu0 %v2151_v1  ;;  %1636 = vmatprep.subr.mxu1 %v2153_v4  ;;  %v1722_v62 = vld [vmem:[%s3500_s5 + $0x68] sm:$0xff]  ;;  %v1737_v1 = vld [vmem:[%s3500_s5 + $0xe0] sm:$0xff] }
 0x11c   : > { %1566 = vmatpush1.msra.mxu0 %v2150_v5  ;;  %1637 = vmatpush1.msra.mxu1 %v2152_v6  ;;  %v1754_v63 = vld [vmem:[%s3500_s5 + $0x168] sm:$0xff]  ;;  %v1769_v4 = vld [vmem:[%s3500_s5 + $0x1e0] sm:$0xff] }
 0x11d   : > { %1567 = vmatprep.subr.mxu0 %v2147_v7  ;;  %1638 = vmatprep.subr.mxu1 %v2149_v8  ;;  %v1721_v5 = vld [vmem:[%s3500_s5 + $0x60] sm:$0xff]  ;;  %v1736_v7 = vld [vmem:[%s3500_s5 + $0xd8] sm:$0xff] }
 0x11e   : > { %1568 = vmatpush1.msra.mxu0 %v2146_v9  ;;  %1639 = vmatpush1.msra.mxu1 %v2148_v10  ;;  %v1753_v6 = vld [vmem:[%s3500_s5 + $0x160] sm:$0xff]  ;;  %v1768_v8 = vld [vmem:[%s3500_s5 + $0x1d8] sm:$0xff] }
 0x11f   : > { %1569 = vmatprep.subr.mxu0 %v2143_v11  ;;  %1640 = vmatprep.subr.mxu1 %v2145_v12  ;;  %v1720_v9 = vld [vmem:[%s3500_s5 + $0x58] sm:$0xff]  ;;  %v1735_v11 = vld [vmem:[%s3500_s5 + $0xd0] sm:$0xff] }
 0x120   : > { %1570 = vmatpush1.msra.mxu0 %v2142_v13  ;;  %1641 = vmatpush1.msra.mxu1 %v2144_v14  ;;  %v1752_v10 = vld [vmem:[%s3500_s5 + $0x158] sm:$0xff]  ;;  %v1767_v12 = vld [vmem:[%s3500_s5 + $0x1d0] sm:$0xff] }
 0x121   : > { %1571 = vmatprep.subr.mxu0 %v2139_v15  ;;  %1642 = vmatprep.subr.mxu1 %v2141_v16  ;;  %v1719_v13 = vld [vmem:[%s3500_s5 + $0x50] sm:$0xff]  ;;  %v1734_v15 = vld [vmem:[%s3500_s5 + $0xc8] sm:$0xff] }
 0x122   : > { %1572 = vmatpush1.msra.mxu0 %v2138_v17  ;;  %1643 = vmatpush1.msra.mxu1 %v2140_v41  ;;  %v1751_v14 = vld [vmem:[%s3500_s5 + $0x150] sm:$0xff]  ;;  %v1766_v16 = vld [vmem:[%s3500_s5 + $0x1c8] sm:$0xff] }
 0x123   : > { %1573 = vmatprep.subr.mxu0 %v2135_v18  ;;  %1644 = vmatprep.subr.mxu1 %v2137_v52  ;;  %v1718_v17 = vld [vmem:[%s3500_s5 + $0x48] sm:$0xff]  ;;  %v1733_v18 = vld [vmem:[%s3500_s5 + $0xc0] sm:$0xff] }
 0x124   : > { %1574 = vmatpush1.msra.mxu0 %v2134_v19  ;;  %1645 = vmatpush1.msra.mxu1 %v2136_v20  ;;  %v1750_v41 = vld [vmem:[%s3500_s5 + $0x148] sm:$0xff]  ;;  %v1765_v52 = vld [vmem:[%s3500_s5 + $0x1c0] sm:$0xff] }
 0x125   : > { %1575 = vmatprep.subr.mxu0 %v2131_v23  ;;  %1646 = vmatprep.subr.mxu1 %v2133_v24  ;;  %v1717_v19 = vld [vmem:[%s3500_s5 + $0x40] sm:$0xff]  ;;  %v1732_v23 = vld [vmem:[%s3500_s5 + $0xb8] sm:$0xff] }
 0x126   : > { %1576 = vmatpush1.msra.mxu0 %v2130_v25  ;;  %1647 = vmatpush1.msra.mxu1 %v2132_v26  ;;  %v1749_v20 = vld [vmem:[%s3500_s5 + $0x140] sm:$0xff]  ;;  %v1764_v24 = vld [vmem:[%s3500_s5 + $0x1b8] sm:$0xff] }
 0x127   : > { %1577 = vmatprep.subr.mxu0 %v2127_v27  ;;  %1648 = vmatprep.subr.mxu1 %v2129_v28  ;;  %v1716_v25 = vld [vmem:[%s3500_s5 + $0x38] sm:$0xff]  ;;  %v1731_v27 = vld [vmem:[%s3500_s5 + $0xb0] sm:$0xff] }
 0x128   : > { %1578 = vmatpush1.msra.mxu0 %v2126_v42  ;;  %1649 = vmatpush1.msra.mxu1 %v2128_v53  ;;  %v1748_v26 = vld [vmem:[%s3500_s5 + $0x138] sm:$0xff]  ;;  %v1763_v28 = vld [vmem:[%s3500_s5 + $0x1b0] sm:$0xff] }
 0x129   : > { %1579 = vmatprep.subr.mxu0 %v2123_v29  ;;  %1650 = vmatprep.subr.mxu1 %v2125_v2  ;;  %v1715_v42 = vld [vmem:[%s3500_s5 + $0x30] sm:$0xff]  ;;  %v1730_v29 = vld [vmem:[%s3500_s5 + $0xa8] sm:$0xff] }
 0x12a   : > { %1580 = vmatpush1.msra.mxu0 %v2122_v30  ;;  %1651 = vmatpush1.msra.mxu1 %v2124_v31  ;;  %v1747_v53 = vld [vmem:[%s3500_s5 + $0x130] sm:$0xff]  ;;  %v1762_v2 = vld [vmem:[%s3500_s5 + $0x1a8] sm:$0xff] }
 0x12b   : > { %1581 = vmatprep.subr.mxu0 %v2119_v32  ;;  %1652 = vmatprep.subr.mxu1 %v2121_v33  ;;  %v1714_v30 = vld [vmem:[%s3500_s5 + $0x28] sm:$0xff]  ;;  %v1729_v32 = vld [vmem:[%s3500_s5 + $0xa0] sm:$0xff] }
 0x12c   : > { %1582 = vmatpush1.msra.mxu0 %v2118_v34  ;;  %1653 = vmatpush1.msra.mxu1 %v2120_v35  ;;  %v1746_v31 = vld [vmem:[%s3500_s5 + $0x128] sm:$0xff]  ;;  %v1761_v33 = vld [vmem:[%s3500_s5 + $0x1a0] sm:$0xff] }
 0x12d   : > { %1583 = vmatprep.subr.mxu0 %v2115_v36  ;;  %1654 = vmatprep.subr.mxu1 %v2117_v38  ;;  %v1713_v34 = vld [vmem:[%s3500_s5 + $0x20] sm:$0xff]  ;;  %v1728_v36 = vld [vmem:[%s3500_s5 + $0x98] sm:$0xff] }
 0x12e   : > { %1584 = vmatpush1.msra.mxu0 %v2114_v3  ;;  %1655 = vmatpush1.msra.mxu1 %v2116_v39  ;;  %v1745_v35 = vld [vmem:[%s3500_s5 + $0x120] sm:$0xff]  ;;  %v1760_v38 = vld [vmem:[%s3500_s5 + $0x198] sm:$0xff] }
 0x12f   : > { %1585 = vmatprep.subr.mxu0 %v2111_v40  ;;  %1656 = vmatprep.subr.mxu1 %v2113_v21  ;;  %v1712_v3 = vld [vmem:[%s3500_s5 + $0x18] sm:$0xff]  ;;  %v1727_v40 = vld [vmem:[%s3500_s5 + $0x90] sm:$0xff] }
 0x130   : > { %1586 = vmatpush1.msra.mxu0 %v2110_v43  ;;  %1657 = vmatpush1.msra.mxu1 %v2112_v44  ;;  %v1744_v39 = vld [vmem:[%s3500_s5 + $0x118] sm:$0xff]  ;;  %v1759_v21 = vld [vmem:[%s3500_s5 + $0x190] sm:$0xff] }
 0x131   : > { %1587 = vmatprep.subr.mxu0 %v2107_v45  ;;  %1658 = vmatprep.subr.mxu1 %v2109_v46  ;;  %v1711_v43 = vld [vmem:[%s3500_s5 + $0x10] sm:$0xff]  ;;  %v1726_v45 = vld [vmem:[%s3500_s5 + $0x88] sm:$0xff] }
 0x132   : > { %1588 = vmatpush1.msra.mxu0 %v2106_v47  ;;  %1659 = vmatpush1.msra.mxu1 %v2108_v48  ;;  %v1743_v44 = vld [vmem:[%s3500_s5 + $0x110] sm:$0xff]  ;;  %v1758_v46 = vld [vmem:[%s3500_s5 + $0x188] sm:$0xff] }
 0x133   : > { %1589 = vmatprep.subr.mxu0 %v2103_v49  ;;  %1660 = vmatprep.subr.mxu1 %v2105_v22  ;;  %v1710_v47 = vld [vmem:[%s3500_s5 + $0x8] sm:$0xff]  ;;  %v1725_v49 = vld [vmem:[%s3500_s5 + $0x80] sm:$0xff] }
 0x134   : > { %1590 = vmatpush1.msra.mxu0 %v2102_v50  ;;  %1623 = vmatprep.mubr.f32.mxu0 %v2428_v0  ;;  %v1742_v48 = vld [vmem:[%s3500_s5 + $0x108] sm:$0xff]  ;;  %v1757_v22 = vld [vmem:[%s3500_s5 + $0x180] sm:$0xff] }
 0x135   : > { %1661 = vmatpush1.msra.mxu1 %v2104_v51  ;;  %1694 = vmatprep.mubr.f32.mxu1 %v2428_v0  ;;  %v1756_v0 = vld [vmem:[%s3500_s5 + $0x178] sm:$0xff]  ;;  %v1709_v50 = vld [vmem:[%s3500_s5] sm:$0xff] }
 0x136   : > { %1624 = vmatmul.mubr.f32.vlgmr.msra.gmra.mxu0 %v2874_v37  ;;  %1695 = vmatmul.mubr.f32.vlgmr.msra.gmra.mxu1 %v2874_v37  ;;  %v1739_v37 = vld [vmem:[%s3500_s5 + $0xf0] sm:$0xff]  ;;  %v1741_v51 = vld [vmem:[%s3500_s5 + $0x100] sm:$0xff] }
 0x137   : > { %2196 = vmatprep.subr.mxu0 %v1740_v54  ;;  %2231 = vmatprep.subr.mxu1 %v1772_v55  ;;  %v1229_v54 = vlaneseq }
 0x138   : > { %2197 = vmatpush3.msra.mxu0 %v1724_v56  ;;  %2232 = vmatpush3.msra.mxu1 %v1756_v0 }
 0x139   : > { %2198 = vmatprep.subr.mxu0 %v1739_v37  ;;  %2233 = vmatprep.subr.mxu1 %v1771_v57  ;;  %v1230_v55 = vshrl.u32 %v1229_v54, 7 }
 0x13a   : > { %2199 = vmatpush3.msra.mxu0 %v1723_v58  ;;  %2234 = vmatpush3.msra.mxu1 %v1755_v59  ;;  %v991_v58 = vld [vmem:[%s3499_s4] sm:$0xf] }
 0x13b   : > { %2200 = vmatprep.subr.mxu0 %v1738_v60  ;;  %2235 = vmatprep.subr.mxu1 %v1770_v61  ;;  %v1231_v37 = vsub.s32 0, %v1230_v55  ;;  %v1239_v57 = vsub.s32 2, %v1230_v55  ;;  %v1235_v59 = vsub.s32 1, %v1230_v55  ;;  %v1243_v60 = vsub.s32 3, %v1230_v55 }
 0x13c   : > { %2201 = vmatpush3.msra.mxu0 %v1722_v62  ;;  %2236 = vmatpush3.msra.mxu1 %v1754_v63 }
 0x13d   : > { %2202 = vmatprep.subr.mxu0 %v1737_v1  ;;  %2237 = vmatprep.subr.mxu1 %v1769_v4  ;;  %v1232_v63 = vrot.slane %v991_v58, %v1231_v37  ;;  %v1240_v1 = vrot.slane %v991_v58, %v1239_v57 }
 0x13e   : > { %2203 = vmatpush3.msra.mxu0 %v1721_v5  ;;  %2238 = vmatpush3.msra.mxu1 %v1753_v6  ;;  %v1236_v6 = vrot.slane %v991_v58, %v1235_v59 }
 0x13f   : > { %2204 = vmatprep.subr.mxu0 %v1736_v7  ;;  %2239 = vmatprep.subr.mxu1 %v1768_v8  ;;  %v1244_v7 = vrot.slane %v991_v58, %v1243_v60 }
 0x140   : > { %2205 = vmatpush3.msra.mxu0 %v1720_v9  ;;  %2240 = vmatpush3.msra.mxu1 %v1752_v10 }
 0x141   : > { %2206 = vmatprep.subr.mxu0 %v1735_v11  ;;  %2241 = vmatprep.subr.mxu1 %v1767_v12 }
 0x142   : > { %2207 = vmatpush3.msra.mxu0 %v1719_v13  ;;  %2242 = vmatpush3.msra.mxu1 %v1751_v14 }
 0x143   : > { %2208 = vmatprep.subr.mxu0 %v1734_v15  ;;  %2243 = vmatprep.subr.mxu1 %v1766_v16 }
 0x144   : > { %2209 = vmatpush3.msra.mxu0 %v1718_v17  ;;  %2244 = vmatpush3.msra.mxu1 %v1750_v41 }
 0x145   : > { %2210 = vmatprep.subr.mxu0 %v1733_v18  ;;  %2245 = vmatprep.subr.mxu1 %v1765_v52 }
 0x146   : > { %2211 = vmatpush3.msra.mxu0 %v1717_v19  ;;  %2246 = vmatpush3.msra.mxu1 %v1749_v20 }
 0x147   : > { %2212 = vmatprep.subr.mxu0 %v1732_v23  ;;  %2247 = vmatprep.subr.mxu1 %v1764_v24 }
 0x148   : > { %2213 = vmatpush3.msra.mxu0 %v1716_v25  ;;  %2248 = vmatpush3.msra.mxu1 %v1748_v26 }
 0x149   : > { %2214 = vmatprep.subr.mxu0 %v1731_v27  ;;  %2249 = vmatprep.subr.mxu1 %v1763_v28 }
 0x14a   : > { %2215 = vmatpush3.msra.mxu0 %v1715_v42  ;;  %2250 = vmatpush3.msra.mxu1 %v1747_v53 }
 0x14b   : > { %2216 = vmatprep.subr.mxu0 %v1730_v29  ;;  %2251 = vmatprep.subr.mxu1 %v1762_v2  ;;  %v2166_v2 = vld [vmem:[%s3501_s6] ss:$0 sm:$0xff] }
 0x14c   : > { %2217 = vmatpush3.msra.mxu0 %v1714_v30  ;;  %2252 = vmatpush3.msra.mxu1 %v1746_v31 }
 0x14d   : > { %2218 = vmatprep.subr.mxu0 %v1729_v32  ;;  %2253 = vmatprep.subr.mxu1 %v1761_v33 }
 0x14e   : > { %2219 = vmatpush3.msra.mxu0 %v1713_v34  ;;  %2254 = vmatpush3.msra.mxu1 %v1745_v35 }
 0x14f   : > { %2220 = vmatprep.subr.mxu0 %v1728_v36  ;;  %2255 = vmatprep.subr.mxu1 %v1760_v38 }
 0x150   : > { %2221 = vmatpush3.msra.mxu0 %v1712_v3  ;;  %2256 = vmatpush3.msra.mxu1 %v1744_v39 }
 0x151   : > { %2222 = vmatprep.subr.mxu0 %v1727_v40  ;;  %2257 = vmatprep.subr.mxu1 %v1759_v21 }
 0x152   : > { %2223 = vmatpush3.msra.mxu0 %v1711_v43  ;;  %2258 = vmatpush3.msra.mxu1 %v1743_v44 }
 0x153   : > { %2224 = vmatprep.subr.mxu0 %v1726_v45  ;;  %2259 = vmatprep.subr.mxu1 %v1758_v46 }
 0x154   : > { %2225 = vmatpush3.msra.mxu0 %v1710_v47  ;;  %2260 = vmatpush3.msra.mxu1 %v1742_v48 }
 0x155   : > { %2226 = vmatprep.subr.mxu0 %v1725_v49  ;;  %2261 = vmatprep.subr.mxu1 %v1757_v22 }
 0x156   : > { %2227 = vmatpush3.msra.mxu0 %v1709_v50  ;;  %2262 = vmatpush3.msra.mxu1 %v1741_v51 }
 0x1b3   : > { %v1152_v56 = vpop.f32.mrf.mxu0  ;;  %v1223_v0 = vpop.f32.mrf.mxu1 }
 0x1b4   : > { %v1249_v8 = vadd.f32 %v1232_v63, %v1152_v56  ;;  %v1251_v9 = vadd.f32 %v1240_v1, %v1223_v0 }
 0x1b5   : > { %v1154_v61 = vpop.f32.mrf.mxu0  ;;  %v1225_v62 = vpop.f32.mrf.mxu1 }
 0x1b6   : > { %v1250_v12 = vadd.f32 %v1236_v6, %v1154_v61  ;;  %v1252_v13 = vadd.f32 %v1244_v7, %v1225_v62 }
 0x1d4   : > { %v1399_v4 = vpop.f32.mrf.mxu0  ;;  %v1470_v5 = vpop.f32.mrf.mxu1 }
 0x1d5   : > { %v1475_v14 = vadd.f32 %v1399_v4, %v1249_v8  ;;  %v1477_v15 = vadd.f32 %v1470_v5, %v1251_v9 }
 0x1d6   : > { %v1401_v10 = vpop.f32.mrf.mxu0  ;;  %v1472_v11 = vpop.f32.mrf.mxu1 }
 0x1d7   : > { %v1476_v41 = vadd.f32 %v1401_v10, %v1250_v12  ;;  %v1478_v18 = vadd.f32 %v1472_v11, %v1252_v13 }
 0x1f6   : > { %v1625_v16 = vpop.f32.mrf.mxu0  ;;  %v1696_v17 = vpop.f32.mrf.mxu1 }
 0x1f7   : > { %v1701_v52 = vadd.f32 %v1625_v16, %v1475_v14  ;;  %v1703_v19 = vadd.f32 %v1696_v17, %v1477_v15 }
 0x1f8   : > { %v1627_v20 = vpop.f32.mrf.mxu0  ;;  %v1698_v23 = vpop.f32.mrf.mxu1 }
 0x1f9   : > { %v1702_v24 = vadd.f32 %v1627_v20, %v1476_v41  ;;  %v1704_v25 = vadd.f32 %v1698_v23, %v1478_v18  ;;  %v1705_v28 = vmax.f32 %v1701_v52, 0.0  ;;  %v1707_v42 = vmax.f32 %v1703_v19, 0.0 }
 0x1fb   : > { %v1706_v26 = vmax.f32 %v1702_v24, 0.0  ;;  %v1708_v27 = vmax.f32 %v1704_v25, 0.0 }
 0x1fd   : > { %1844 = vmatprep.mubr.f32.mxu0 %v1706_v26  ;;  %1914 = vmatprep.mubr.f32.mxu1 %v1708_v27 }
 0x1fe   : > { %1845 = vmatmul.mubr.f32.vlgmr.msra.gmra.mxu0 %v1705_v28  ;;  %1915 = vmatmul.mubr.f32.vlgmr.msra.gmra.mxu1 %v1707_v42 }
 0x2be   : > { %v2228_v53 = vpop.f32.mrf.mxu0  ;;  %v2263_v29 = vpop.f32.mrf.mxu1 }
 0x2c0   : > { %v2229_v30 = vpop.f32.mrf.mxu0  ;;  %v2264_v31 = vpop.f32.mrf.mxu1 }
 0x2c1   : > { %v2230_v32 = vadd.f32 %v2229_v30, %v2228_v53  ;;  %v2265_v34 = vadd.f32 %v2264_v31, %v2263_v29 }
 0x2c3   : > { %v1847_v33 = vadd.f32 %v2230_v32, %v2166_v2 }
 0x2c5   : > { %v1917_v35 = vadd.f32 %v2265_v34, %v1847_v33 }
 0x2c7   : > { %1920 = vst [vmem:[%s306_s29] sm:$0xff] %v1917_v35 }
 0x2c8   : > { %2379 = shalt.err (!%p2376_p3)
}
 0x2c9   : > { %s2380_s8 = scalar_lea.hbm %s1933_s18, 128  ;;  %s2384_s13 = scalar_lea.hbm %s3502_s7, 256 }
 0x2ca   : > { %p2381_p4 = scmp.ne.s32.totalorder %s1933_s18, %s2380_s8  ;;  %p2385_p9 = scmp.lt.s32.totalorder %s1933_s18, %s3502_s7 }
 0x2cb   : > { %p2386_p10 = scmp.lt.s32.totalorder %s2384_s13, %s2380_s8 }
 0x2cc   : > { %p2382_p7 = pnand %p2381_p4, %p2510_p5 }
 0x2cd   : > { %p2387_p11 = por %p2386_p10, %p2385_p9 }
 0x2ce   : > { %p2383_p8 = pneg %p2382_p7 }
 0x2d0   : > { %p2388_p12 = pnand %p2387_p11, %p2383_p8 }
 0x2d2   : > { %2391 = shalt.err (!%p2388_p12)
}
 0x2d3   : > { %2322 = dma.vmem_to_hbm [thread:$0]  (%p2510_p5), %s1936_s15, 128, %s1933_s18, %s1922_s19  }
 0x2d4 PF: > { %p2328_p13 = scmp.ge.s32.totalorder %s2426_s27, 2  ;;  %s1947_s16 = sand.u32 1, %s2414_s24  }
 0x2d5   : > { %s1948_s17 = scalar_lea.sflag [#allocation3], %s1947_s16 }
 0x2d6   : > { %p2325_p0 = pnand %p2328_p13, %p2514_p6 }
 0x2d8   : > { %p2326_p1 = pneg %p2325_p0 }
 0x2da   : > { %2409 = dma.done.wait (%p2326_p1), %s1948_s17, 128  }
 0x2db   : > { %2411 = vsyncadd (%p2326_p1), %s1948_s17, 4294967168  ;;  %p17_p2 = scmp.ge.s32.totalorder %s2497_s30, 4   ;;  %s3505_s24 = smov %s2418_s25 }
 0x2dc   : > { %s3506_s25 = smov %s2422_s26  ;;  %s3507_s26 = smov %s2508_s10 }
 0x2dd   : > { %s3508_s27 = smov %s2497_s30  ;;  %19 = sbr.rel (!%p17_p2) target bundleno = 3 (0x3), region = 91 }
 0x2e2   :  { %1953 = vsyncpa [#allocation3], 1 }
 0x2e3   :  { %1955 = vsyncpa [#allocation3 + $0x1], 1 }

</bundles_post_ra>
